<compile_context>
chip_gen: v6e
topology: v6e:2x2x1
jax: 0.10.0
libtpu: 0.0.40
codegen_flags: <defaults>
</compile_context>

<pallas_src>
import jax
import jax.numpy as jnp
from jax.experimental import pallas as pl
from jax.experimental.pallas import tpu as pltpu

ENC_DIMS = (768, 256, 128, 64, 32, 16, 4, 2)
DEC_DIMS = (2, 4, 16, 32, 64, 128, 256, 768)
DIMS = ENC_DIMS + DEC_DIMS[1:]            # 15 dims -> 14 linear layers
N_LAYERS = len(DIMS) - 1
CODE_LAYER = len(ENC_DIMS) - 2            # layer index whose output is `codes`


def _round_up(n, m):
    return ((n + m - 1) // m) * m


PAD_DIMS = tuple(_round_up(d, 128) for d in DIMS)
BIAS_TOTAL = sum(PAD_DIMS[1:])            # width of the fused bias buffer


def _autoencoder_kernel(x_ref, *refs):
    """Full encoder+decoder MLP for one batch tile.

    refs = (w_0..w_{13} [bf16 padded], b_all [f32 fused], codes_ref, dec_ref)
    """
    w_refs = refs[:N_LAYERS]
    b_all_ref = refs[N_LAYERS]
    codes_ref = refs[N_LAYERS + 1]
    dec_ref = refs[N_LAYERS + 2]

    h = x_ref[...].astype(jnp.float32)
    off = 0
    for i in range(N_LAYERS):
        out_p = PAD_DIMS[i + 1]
        # bf16 x bf16 -> f32 accumulate on the MXU
        z = jnp.dot(h.astype(jnp.bfloat16), w_refs[i][...],
                    preferred_element_type=jnp.float32)
        z = z + b_all_ref[:, off:off + out_p]      # (TB, out_p) + (1, out_p)
        off += out_p
        if i == N_LAYERS - 1:
            h = jax.nn.sigmoid(z)                  # final decoder layer
        else:
            h = jnp.tanh(z)                        # f32 elementwise (v5e-safe)
        if i == CODE_LAYER:
            codes_ref[...] = h.astype(codes_ref.dtype)
    dec_ref[...] = h.astype(dec_ref.dtype)


def prepare_params(weights, biases):
    """Pad & pack parameters ONCE (hoisted out of the per-call path).

    weights[i]: (DIMS[i], DIMS[i+1]) f32 (i.e. PyTorch weight.T); biases[i]: (DIMS[i+1],).
    Returns (tuple of bf16 padded weights, fused f32 bias buffer (1, BIAS_TOTAL)).
    """
    w_pad = []
    b_parts = []
    for i in range(N_LAYERS):
        wp = jnp.zeros((PAD_DIMS[i], PAD_DIMS[i + 1]), jnp.bfloat16)
        wp = wp.at[:DIMS[i], :DIMS[i + 1]].set(weights[i].astype(jnp.bfloat16))
        w_pad.append(wp)
        bp = jnp.zeros((PAD_DIMS[i + 1],), jnp.float32)
        bp = bp.at[:DIMS[i + 1]].set(biases[i].astype(jnp.float32))
        b_parts.append(bp)
    b_all = jnp.concatenate(b_parts).reshape(1, BIAS_TOTAL)
    return tuple(w_pad), b_all


def autoencoder_forward(x, packed_params, *, tb=256):
    """x: (B, 768). Returns (codes (B, 2), decoded (B, 768)), both float32."""
    w_pad, b_all = packed_params
    B = x.shape[0]

    # Batch tile: large (MXU-filling) by default, shrunk for tiny batches.
    TB = min(tb, _round_up(B, 8))
    B_pad = _round_up(B, TB)

    x_pad = jnp.zeros((B_pad, PAD_DIMS[0]), jnp.float32)
    x_pad = x_pad.at[:B, :DIMS[0]].set(x.astype(jnp.float32))

    grid = (B_pad // TB,)

    in_specs = [pl.BlockSpec((TB, PAD_DIMS[0]), lambda i: (i, 0))]
    for li in range(N_LAYERS):
        in_specs.append(
            pl.BlockSpec((PAD_DIMS[li], PAD_DIMS[li + 1]), lambda i: (0, 0)))
    in_specs.append(pl.BlockSpec((1, BIAS_TOTAL), lambda i: (0, 0)))

    out_specs = (
        pl.BlockSpec((TB, PAD_DIMS[CODE_LAYER + 1]), lambda i: (i, 0)),   # codes
        pl.BlockSpec((TB, PAD_DIMS[-1]), lambda i: (i, 0)),               # decoded
    )
    out_shape = (
        jax.ShapeDtypeStruct((B_pad, PAD_DIMS[CODE_LAYER + 1]), jnp.float32),
        jax.ShapeDtypeStruct((B_pad, PAD_DIMS[-1]), jnp.float32),
    )

    codes_pad, dec_pad = pl.pallas_call(
        _autoencoder_kernel,
        out_shape=out_shape,
        grid_spec=pltpu.PrefetchScalarGridSpec(
            num_scalar_prefetch=0,
            grid=grid,
            in_specs=in_specs,
            out_specs=out_specs,
        ),
        compiler_params=pltpu.CompilerParams(
            dimension_semantics=("parallel",)),
    )(x_pad, *w_pad, b_all)

    codes = codes_pad[:B, :DIMS[CODE_LAYER + 1]]
    decoded = dec_pad[:B, :DIMS[-1]]
    return codes, decoded


def init_params(key):
    """Deterministic init mimicking PyTorch nn.Linear default U(-1/sqrt(fan_in), +)."""
    weights, biases = [], []
    for i in range(N_LAYERS):
        fan_in, fan_out = DIMS[i], DIMS[i + 1]
        key, kw, kb = jax.random.split(key, 3)
        bound = 1.0 / (fan_in ** 0.5)
        w = jax.random.uniform(kw, (fan_in, fan_out), jnp.float32, -bound, bound)
        b = jax.random.uniform(kb, (fan_out,), jnp.float32, -bound, bound)
        weights.append(w)
        biases.append(b)
    return weights, biases


def _reference(x, weights, biases, use_bf16=False):
    """Pure-JAX reference. use_bf16=True mirrors the kernel's matmul precision."""
    h = x.astype(jnp.float32)
    codes = None
    for i in range(N_LAYERS):
        if use_bf16:
            z = jnp.dot(h.astype(jnp.bfloat16), weights[i].astype(jnp.bfloat16),
                        preferred_element_type=jnp.float32)
        else:
            z = jnp.dot(h, weights[i], preferred_element_type=jnp.float32)
        z = z + biases[i]
        h = jax.nn.sigmoid(z) if i == N_LAYERS - 1 else jnp.tanh(z)
        if i == CODE_LAYER:
            codes = h
    return codes, h


if __name__ == "__main__":
    key = jax.random.PRNGKey(0)
    key, kx = jax.random.split(key)
    x = jax.random.normal(kx, (2, 768), jnp.float32)     # batch=2, input dim=768

    weights, biases = init_params(key)
    packed = prepare_params(weights, biases)              # padded/packed once

    codes, decoded = autoencoder_forward(x, packed)
    codes, decoded = jax.block_until_ready((codes, decoded))

    assert codes.shape == (2, 2), codes.shape
    assert decoded.shape == (2, 768), decoded.shape

    # Match against a reference with the same bf16 matmul precision (tight),
    # and against the pure-f32 reference (loose, covers bf16 weight drift).
    codes_bf, dec_bf = _reference(x, weights, biases, use_bf16=True)
    assert jnp.allclose(codes, codes_bf, atol=1e-3, rtol=1e-3), "codes mismatch (bf16 ref)"
    assert jnp.allclose(decoded, dec_bf, atol=1e-3, rtol=1e-3), "decoded mismatch (bf16 ref)"

    codes_f32, dec_f32 = _reference(x, weights, biases, use_bf16=False)
    assert jnp.allclose(codes, codes_f32, atol=3e-2), "codes mismatch (f32 ref)"
    assert jnp.allclose(decoded, dec_f32, atol=3e-2), "decoded mismatch (f32 ref)"

    print("KERNEL_OK")
</pallas_src>

<mosaic_0001>
module attributes {stable_mosaic.version = 11 : i64} {
  func.func @_autoencoder_kernel(%arg0: i32, %arg1: memref<8x768xf32, #tpu.memory_space<vmem>>, %arg2: memref<768x256xbf16, #tpu.memory_space<vmem>>, %arg3: memref<256x128xbf16, #tpu.memory_space<vmem>>, %arg4: memref<128x128xbf16, #tpu.memory_space<vmem>>, %arg5: memref<128x128xbf16, #tpu.memory_space<vmem>>, %arg6: memref<128x128xbf16, #tpu.memory_space<vmem>>, %arg7: memref<128x128xbf16, #tpu.memory_space<vmem>>, %arg8: memref<128x128xbf16, #tpu.memory_space<vmem>>, %arg9: memref<128x128xbf16, #tpu.memory_space<vmem>>, %arg10: memref<128x128xbf16, #tpu.memory_space<vmem>>, %arg11: memref<128x128xbf16, #tpu.memory_space<vmem>>, %arg12: memref<128x128xbf16, #tpu.memory_space<vmem>>, %arg13: memref<128x128xbf16, #tpu.memory_space<vmem>>, %arg14: memref<128x256xbf16, #tpu.memory_space<vmem>>, %arg15: memref<256x768xbf16, #tpu.memory_space<vmem>>, %arg16: memref<1x2688xf32, #tpu.memory_space<vmem>>, %arg17: memref<8x128xf32, #tpu.memory_space<vmem>>, %arg18: memref<8x768xf32, #tpu.memory_space<vmem>>) attributes {dimension_semantics = [#tpu.dimension_semantics<parallel>], iteration_bounds = array<i64: 1>, scalar_prefetch = 0 : i64, scratch_operands = 0 : i64, tpu.core_type = #tpu.core_type<tc>, window_params = [{transform_indices = @transform_0, window_bounds = array<i64: 8, 768>}, {pipeline_mode = #tpu.pipeline_mode<synchronous>, transform_indices = @transform_1, window_bounds = array<i64: 768, 256>}, {pipeline_mode = #tpu.pipeline_mode<synchronous>, transform_indices = @transform_2, window_bounds = array<i64: 256, 128>}, {pipeline_mode = #tpu.pipeline_mode<synchronous>, transform_indices = @transform_3, window_bounds = array<i64: 128, 128>}, {pipeline_mode = #tpu.pipeline_mode<synchronous>, transform_indices = @transform_4, window_bounds = array<i64: 128, 128>}, {pipeline_mode = #tpu.pipeline_mode<synchronous>, transform_indices = @transform_5, window_bounds = array<i64: 128, 128>}, {pipeline_mode = #tpu.pipeline_mode<synchronous>, transform_indices = @transform_6, window_bounds = array<i64: 128, 128>}, {pipeline_mode = #tpu.pipeline_mode<synchronous>, transform_indices = @transform_7, window_bounds = array<i64: 128, 128>}, {pipeline_mode = #tpu.pipeline_mode<synchronous>, transform_indices = @transform_8, window_bounds = array<i64: 128, 128>}, {pipeline_mode = #tpu.pipeline_mode<synchronous>, transform_indices = @transform_9, window_bounds = array<i64: 128, 128>}, {pipeline_mode = #tpu.pipeline_mode<synchronous>, transform_indices = @transform_10, window_bounds = array<i64: 128, 128>}, {pipeline_mode = #tpu.pipeline_mode<synchronous>, transform_indices = @transform_11, window_bounds = array<i64: 128, 128>}, {pipeline_mode = #tpu.pipeline_mode<synchronous>, transform_indices = @transform_12, window_bounds = array<i64: 128, 128>}, {pipeline_mode = #tpu.pipeline_mode<synchronous>, transform_indices = @transform_13, window_bounds = array<i64: 128, 256>}, {pipeline_mode = #tpu.pipeline_mode<synchronous>, transform_indices = @transform_14, window_bounds = array<i64: 256, 768>}, {pipeline_mode = #tpu.pipeline_mode<synchronous>, transform_indices = @transform_15, window_bounds = array<i64: 1, 2688>}, {transform_indices = @transform_16, window_bounds = array<i64: 8, 128>}, {transform_indices = @transform_17, window_bounds = array<i64: 8, 768>}]} {
    %c0 = arith.constant 0 : index
    %c0_0 = arith.constant 0 : index
    %0 = vector.load %arg1[%c0, %c0_0] : memref<8x768xf32, #tpu.memory_space<vmem>>, vector<8x768xf32>
    %1 = arith.truncf %0 : vector<8x768xf32> to vector<8x768xbf16>
    %c0_1 = arith.constant 0 : index
    %c0_2 = arith.constant 0 : index
    %2 = vector.load %arg2[%c0_1, %c0_2] : memref<768x256xbf16, #tpu.memory_space<vmem>>, vector<768x256xbf16>
    %cst = arith.constant dense<0.000000e+00> : vector<8x256xf32>
    %3 = tpu.matmul %1, %2, %cst {dimension_numbers = #tpu.dot_dimension_numbers<[1], [0], [0], [1], [0, 0, 1, 1], [], []>} : vector<8x768xbf16>, vector<768x256xbf16>, vector<8x256xf32> -> vector<8x256xf32>
    %c0_3 = arith.constant 0 : index
    %c0_4 = arith.constant 0 : index
    %4 = vector.load %arg16[%c0_3, %c0_4] : memref<1x2688xf32, #tpu.memory_space<vmem>>, vector<1x256xf32>
    %5 = vector.broadcast %4 : vector<1x256xf32> to vector<8x256xf32>
    %6 = arith.addf %3, %5 : vector<8x256xf32>
    %7 = math.tanh %6 : vector<8x256xf32>
    %8 = arith.truncf %7 : vector<8x256xf32> to vector<8x256xbf16>
    %c0_5 = arith.constant 0 : index
    %c0_6 = arith.constant 0 : index
    %9 = vector.load %arg3[%c0_5, %c0_6] : memref<256x128xbf16, #tpu.memory_space<vmem>>, vector<256x128xbf16>
    %cst_7 = arith.constant dense<0.000000e+00> : vector<8x128xf32>
    %10 = tpu.matmul %8, %9, %cst_7 {dimension_numbers = #tpu.dot_dimension_numbers<[1], [0], [0], [1], [0, 0, 1, 1], [], []>} : vector<8x256xbf16>, vector<256x128xbf16>, vector<8x128xf32> -> vector<8x128xf32>
    %c0_8 = arith.constant 0 : index
    %c256 = arith.constant 256 : index
    %11 = vector.load %arg16[%c0_8, %c256] : memref<1x2688xf32, #tpu.memory_space<vmem>>, vector<1x128xf32>
    %12 = vector.broadcast %11 : vector<1x128xf32> to vector<8x128xf32>
    %13 = arith.addf %10, %12 : vector<8x128xf32>
    %14 = math.tanh %13 : vector<8x128xf32>
    %15 = arith.truncf %14 : vector<8x128xf32> to vector<8x128xbf16>
    %c0_9 = arith.constant 0 : index
    %c0_10 = arith.constant 0 : index
    %16 = vector.load %arg4[%c0_9, %c0_10] : memref<128x128xbf16, #tpu.memory_space<vmem>>, vector<128x128xbf16>
    %cst_11 = arith.constant dense<0.000000e+00> : vector<8x128xf32>
    %17 = tpu.matmul %15, %16, %cst_11 {dimension_numbers = #tpu.dot_dimension_numbers<[1], [0], [0], [1], [0, 0, 1, 1], [], []>} : vector<8x128xbf16>, vector<128x128xbf16>, vector<8x128xf32> -> vector<8x128xf32>
    %c0_12 = arith.constant 0 : index
    %c384 = arith.constant 384 : index
    %18 = vector.load %arg16[%c0_12, %c384] : memref<1x2688xf32, #tpu.memory_space<vmem>>, vector<1x128xf32>
    %19 = vector.broadcast %18 : vector<1x128xf32> to vector<8x128xf32>
    %20 = arith.addf %17, %19 : vector<8x128xf32>
    %21 = math.tanh %20 : vector<8x128xf32>
    %22 = arith.truncf %21 : vector<8x128xf32> to vector<8x128xbf16>
    %c0_13 = arith.constant 0 : index
    %c0_14 = arith.constant 0 : index
    %23 = vector.load %arg5[%c0_13, %c0_14] : memref<128x128xbf16, #tpu.memory_space<vmem>>, vector<128x128xbf16>
    %cst_15 = arith.constant dense<0.000000e+00> : vector<8x128xf32>
    %24 = tpu.matmul %22, %23, %cst_15 {dimension_numbers = #tpu.dot_dimension_numbers<[1], [0], [0], [1], [0, 0, 1, 1], [], []>} : vector<8x128xbf16>, vector<128x128xbf16>, vector<8x128xf32> -> vector<8x128xf32>
    %c0_16 = arith.constant 0 : index
    %c512 = arith.constant 512 : index
    %25 = vector.load %arg16[%c0_16, %c512] : memref<1x2688xf32, #tpu.memory_space<vmem>>, vector<1x128xf32>
    %26 = vector.broadcast %25 : vector<1x128xf32> to vector<8x128xf32>
    %27 = arith.addf %24, %26 : vector<8x128xf32>
    %28 = math.tanh %27 : vector<8x128xf32>
    %29 = arith.truncf %28 : vector<8x128xf32> to vector<8x128xbf16>
    %c0_17 = arith.constant 0 : index
    %c0_18 = arith.constant 0 : index
    %30 = vector.load %arg6[%c0_17, %c0_18] : memref<128x128xbf16, #tpu.memory_space<vmem>>, vector<128x128xbf16>
    %cst_19 = arith.constant dense<0.000000e+00> : vector<8x128xf32>
    %31 = tpu.matmul %29, %30, %cst_19 {dimension_numbers = #tpu.dot_dimension_numbers<[1], [0], [0], [1], [0, 0, 1, 1], [], []>} : vector<8x128xbf16>, vector<128x128xbf16>, vector<8x128xf32> -> vector<8x128xf32>
    %c0_20 = arith.constant 0 : index
    %c640 = arith.constant 640 : index
    %32 = vector.load %arg16[%c0_20, %c640] : memref<1x2688xf32, #tpu.memory_space<vmem>>, vector<1x128xf32>
    %33 = vector.broadcast %32 : vector<1x128xf32> to vector<8x128xf32>
    %34 = arith.addf %31, %33 : vector<8x128xf32>
    %35 = math.tanh %34 : vector<8x128xf32>
    %36 = arith.truncf %35 : vector<8x128xf32> to vector<8x128xbf16>
    %c0_21 = arith.constant 0 : index
    %c0_22 = arith.constant 0 : index
    %37 = vector.load %arg7[%c0_21, %c0_22] : memref<128x128xbf16, #tpu.memory_space<vmem>>, vector<128x128xbf16>
    %cst_23 = arith.constant dense<0.000000e+00> : vector<8x128xf32>
    %38 = tpu.matmul %36, %37, %cst_23 {dimension_numbers = #tpu.dot_dimension_numbers<[1], [0], [0], [1], [0, 0, 1, 1], [], []>} : vector<8x128xbf16>, vector<128x128xbf16>, vector<8x128xf32> -> vector<8x128xf32>
    %c0_24 = arith.constant 0 : index
    %c768 = arith.constant 768 : index
    %39 = vector.load %arg16[%c0_24, %c768] : memref<1x2688xf32, #tpu.memory_space<vmem>>, vector<1x128xf32>
    %40 = vector.broadcast %39 : vector<1x128xf32> to vector<8x128xf32>
    %41 = arith.addf %38, %40 : vector<8x128xf32>
    %42 = math.tanh %41 : vector<8x128xf32>
    %43 = arith.truncf %42 : vector<8x128xf32> to vector<8x128xbf16>
    %c0_25 = arith.constant 0 : index
    %c0_26 = arith.constant 0 : index
    %44 = vector.load %arg8[%c0_25, %c0_26] : memref<128x128xbf16, #tpu.memory_space<vmem>>, vector<128x128xbf16>
    %cst_27 = arith.constant dense<0.000000e+00> : vector<8x128xf32>
    %45 = tpu.matmul %43, %44, %cst_27 {dimension_numbers = #tpu.dot_dimension_numbers<[1], [0], [0], [1], [0, 0, 1, 1], [], []>} : vector<8x128xbf16>, vector<128x128xbf16>, vector<8x128xf32> -> vector<8x128xf32>
    %c0_28 = arith.constant 0 : index
    %c896 = arith.constant 896 : index
    %46 = vector.load %arg16[%c0_28, %c896] : memref<1x2688xf32, #tpu.memory_space<vmem>>, vector<1x128xf32>
    %47 = vector.broadcast %46 : vector<1x128xf32> to vector<8x128xf32>
    %48 = arith.addf %45, %47 : vector<8x128xf32>
    %49 = math.tanh %48 : vector<8x128xf32>
    %c0_29 = arith.constant 0 : index
    %c0_30 = arith.constant 0 : index
    %50 = vector.load %arg17[%c0_29, %c0_30] : memref<8x128xf32, #tpu.memory_space<vmem>>, vector<8x128xf32>
    tpu.vector_store %arg17[%c0_29, %c0_30], %49 {strides = array<i32>} : memref<8x128xf32, #tpu.memory_space<vmem>>, vector<8x128xf32>,
    %51 = arith.truncf %49 : vector<8x128xf32> to vector<8x128xbf16>
    %c0_31 = arith.constant 0 : index
    %c0_32 = arith.constant 0 : index
    %52 = vector.load %arg9[%c0_31, %c0_32] : memref<128x128xbf16, #tpu.memory_space<vmem>>, vector<128x128xbf16>
    %cst_33 = arith.constant dense<0.000000e+00> : vector<8x128xf32>
    %53 = tpu.matmul %51, %52, %cst_33 {dimension_numbers = #tpu.dot_dimension_numbers<[1], [0], [0], [1], [0, 0, 1, 1], [], []>} : vector<8x128xbf16>, vector<128x128xbf16>, vector<8x128xf32> -> vector<8x128xf32>
    %c0_34 = arith.constant 0 : index
    %c1024 = arith.constant 1024 : index
    %54 = vector.load %arg16[%c0_34, %c1024] : memref<1x2688xf32, #tpu.memory_space<vmem>>, vector<1x128xf32>
    %55 = vector.broadcast %54 : vector<1x128xf32> to vector<8x128xf32>
    %56 = arith.addf %53, %55 : vector<8x128xf32>
    %57 = math.tanh %56 : vector<8x128xf32>
    %58 = arith.truncf %57 : vector<8x128xf32> to vector<8x128xbf16>
    %c0_35 = arith.constant 0 : index
    %c0_36 = arith.constant 0 : index
    %59 = vector.load %arg10[%c0_35, %c0_36] : memref<128x128xbf16, #tpu.memory_space<vmem>>, vector<128x128xbf16>
    %cst_37 = arith.constant dense<0.000000e+00> : vector<8x128xf32>
    %60 = tpu.matmul %58, %59, %cst_37 {dimension_numbers = #tpu.dot_dimension_numbers<[1], [0], [0], [1], [0, 0, 1, 1], [], []>} : vector<8x128xbf16>, vector<128x128xbf16>, vector<8x128xf32> -> vector<8x128xf32>
    %c0_38 = arith.constant 0 : index
    %c1152 = arith.constant 1152 : index
    %61 = vector.load %arg16[%c0_38, %c1152] : memref<1x2688xf32, #tpu.memory_space<vmem>>, vector<1x128xf32>
    %62 = vector.broadcast %61 : vector<1x128xf32> to vector<8x128xf32>
    %63 = arith.addf %60, %62 : vector<8x128xf32>
    %64 = math.tanh %63 : vector<8x128xf32>
    %65 = arith.truncf %64 : vector<8x128xf32> to vector<8x128xbf16>
    %c0_39 = arith.constant 0 : index
    %c0_40 = arith.constant 0 : index
    %66 = vector.load %arg11[%c0_39, %c0_40] : memref<128x128xbf16, #tpu.memory_space<vmem>>, vector<128x128xbf16>
    %cst_41 = arith.constant dense<0.000000e+00> : vector<8x128xf32>
    %67 = tpu.matmul %65, %66, %cst_41 {dimension_numbers = #tpu.dot_dimension_numbers<[1], [0], [0], [1], [0, 0, 1, 1], [], []>} : vector<8x128xbf16>, vector<128x128xbf16>, vector<8x128xf32> -> vector<8x128xf32>
    %c0_42 = arith.constant 0 : index
    %c1280 = arith.constant 1280 : index
    %68 = vector.load %arg16[%c0_42, %c1280] : memref<1x2688xf32, #tpu.memory_space<vmem>>, vector<1x128xf32>
    %69 = vector.broadcast %68 : vector<1x128xf32> to vector<8x128xf32>
    %70 = arith.addf %67, %69 : vector<8x128xf32>
    %71 = math.tanh %70 : vector<8x128xf32>
    %72 = arith.truncf %71 : vector<8x128xf32> to vector<8x128xbf16>
    %c0_43 = arith.constant 0 : index
    %c0_44 = arith.constant 0 : index
    %73 = vector.load %arg12[%c0_43, %c0_44] : memref<128x128xbf16, #tpu.memory_space<vmem>>, vector<128x128xbf16>
    %cst_45 = arith.constant dense<0.000000e+00> : vector<8x128xf32>
    %74 = tpu.matmul %72, %73, %cst_45 {dimension_numbers = #tpu.dot_dimension_numbers<[1], [0], [0], [1], [0, 0, 1, 1], [], []>} : vector<8x128xbf16>, vector<128x128xbf16>, vector<8x128xf32> -> vector<8x128xf32>
    %c0_46 = arith.constant 0 : index
    %c1408 = arith.constant 1408 : index
    %75 = vector.load %arg16[%c0_46, %c1408] : memref<1x2688xf32, #tpu.memory_space<vmem>>, vector<1x128xf32>
    %76 = vector.broadcast %75 : vector<1x128xf32> to vector<8x128xf32>
    %77 = arith.addf %74, %76 : vector<8x128xf32>
    %78 = math.tanh %77 : vector<8x128xf32>
    %79 = arith.truncf %78 : vector<8x128xf32> to vector<8x128xbf16>
    %c0_47 = arith.constant 0 : index
    %c0_48 = arith.constant 0 : index
    %80 = vector.load %arg13[%c0_47, %c0_48] : memref<128x128xbf16, #tpu.memory_space<vmem>>, vector<128x128xbf16>
    %cst_49 = arith.constant dense<0.000000e+00> : vector<8x128xf32>
    %81 = tpu.matmul %79, %80, %cst_49 {dimension_numbers = #tpu.dot_dimension_numbers<[1], [0], [0], [1], [0, 0, 1, 1], [], []>} : vector<8x128xbf16>, vector<128x128xbf16>, vector<8x128xf32> -> vector<8x128xf32>
    %c0_50 = arith.constant 0 : index
    %c1536 = arith.constant 1536 : index
    %82 = vector.load %arg16[%c0_50, %c1536] : memref<1x2688xf32, #tpu.memory_space<vmem>>, vector<1x128xf32>
    %83 = vector.broadcast %82 : vector<1x128xf32> to vector<8x128xf32>
    %84 = arith.addf %81, %83 : vector<8x128xf32>
    %85 = math.tanh %84 : vector<8x128xf32>
    %86 = arith.truncf %85 : vector<8x128xf32> to vector<8x128xbf16>
    %c0_51 = arith.constant 0 : index
    %c0_52 = arith.constant 0 : index
    %87 = vector.load %arg14[%c0_51, %c0_52] : memref<128x256xbf16, #tpu.memory_space<vmem>>, vector<128x256xbf16>
    %cst_53 = arith.constant dense<0.000000e+00> : vector<8x256xf32>
    %88 = tpu.matmul %86, %87, %cst_53 {dimension_numbers = #tpu.dot_dimension_numbers<[1], [0], [0], [1], [0, 0, 1, 1], [], []>} : vector<8x128xbf16>, vector<128x256xbf16>, vector<8x256xf32> -> vector<8x256xf32>
    %c0_54 = arith.constant 0 : index
    %c1664 = arith.constant 1664 : index
    %89 = vector.load %arg16[%c0_54, %c1664] : memref<1x2688xf32, #tpu.memory_space<vmem>>, vector<1x256xf32>
    %90 = vector.broadcast %89 : vector<1x256xf32> to vector<8x256xf32>
    %91 = arith.addf %88, %90 : vector<8x256xf32>
    %92 = math.tanh %91 : vector<8x256xf32>
    %93 = arith.truncf %92 : vector<8x256xf32> to vector<8x256xbf16>
    %c0_55 = arith.constant 0 : index
    %c0_56 = arith.constant 0 : index
    %94 = vector.load %arg15[%c0_55, %c0_56] : memref<256x768xbf16, #tpu.memory_space<vmem>>, vector<256x768xbf16>
    %cst_57 = arith.constant dense<0.000000e+00> : vector<8x768xf32>
    %95 = tpu.matmul %93, %94, %cst_57 {dimension_numbers = #tpu.dot_dimension_numbers<[1], [0], [0], [1], [0, 0, 1, 1], [], []>} : vector<8x256xbf16>, vector<256x768xbf16>, vector<8x768xf32> -> vector<8x768xf32>
    %c0_58 = arith.constant 0 : index
    %c1920 = arith.constant 1920 : index
    %96 = vector.load %arg16[%c0_58, %c1920] : memref<1x2688xf32, #tpu.memory_space<vmem>>, vector<1x768xf32>
    %97 = vector.broadcast %96 : vector<1x768xf32> to vector<8x768xf32>
    %98 = arith.addf %95, %97 : vector<8x768xf32>
    %99 = arith.negf %98 : vector<8x768xf32>
    %100 = math.exp %99 : vector<8x768xf32>
    %cst_59 = arith.constant 1.000000e+00 : f32
    %101 = vector.broadcast %cst_59 : f32 to vector<8x768xf32>
    %102 = arith.addf %101, %100 : vector<8x768xf32>
    %103 = arith.divf %101, %102 : vector<8x768xf32>
    %c0_60 = arith.constant 0 : index
    %c0_61 = arith.constant 0 : index
    %104 = vector.load %arg18[%c0_60, %c0_61] : memref<8x768xf32, #tpu.memory_space<vmem>>, vector<8x768xf32>
    tpu.vector_store %arg18[%c0_60, %c0_61], %103 {strides = array<i32>} : memref<8x768xf32, #tpu.memory_space<vmem>>, vector<8x768xf32>,
    return
  }
  func.func @transform_0(%arg0: i32) -> (i32, i32) {
    %c0_i32 = arith.constant 0 : i32
    %c0_i32_0 = arith.constant 0 : i32
    return %arg0, %c0_i32 : i32, i32
  }
  func.func @transform_1(%arg0: i32) -> (i32, i32) {
    %c0_i32 = arith.constant 0 : i32
    %c0_i32_0 = arith.constant 0 : i32
    %c0_i32_1 = arith.constant 0 : i32
    return %c0_i32, %c0_i32_0 : i32, i32
  }
  func.func @transform_2(%arg0: i32) -> (i32, i32) {
    %c0_i32 = arith.constant 0 : i32
    %c0_i32_0 = arith.constant 0 : i32
    %c0_i32_1 = arith.constant 0 : i32
    return %c0_i32, %c0_i32_0 : i32, i32
  }
  func.func @transform_3(%arg0: i32) -> (i32, i32) {
    %c0_i32 = arith.constant 0 : i32
    %c0_i32_0 = arith.constant 0 : i32
    %c0_i32_1 = arith.constant 0 : i32
    return %c0_i32, %c0_i32_0 : i32, i32
  }
  func.func @transform_4(%arg0: i32) -> (i32, i32) {
    %c0_i32 = arith.constant 0 : i32
    %c0_i32_0 = arith.constant 0 : i32
    %c0_i32_1 = arith.constant 0 : i32
    return %c0_i32, %c0_i32_0 : i32, i32
  }
  func.func @transform_5(%arg0: i32) -> (i32, i32) {
    %c0_i32 = arith.constant 0 : i32
    %c0_i32_0 = arith.constant 0 : i32
    %c0_i32_1 = arith.constant 0 : i32
    return %c0_i32, %c0_i32_0 : i32, i32
  }
  func.func @transform_6(%arg0: i32) -> (i32, i32) {
    %c0_i32 = arith.constant 0 : i32
    %c0_i32_0 = arith.constant 0 : i32
    %c0_i32_1 = arith.constant 0 : i32
    return %c0_i32, %c0_i32_0 : i32, i32
  }
  func.func @transform_7(%arg0: i32) -> (i32, i32) {
    %c0_i32 = arith.constant 0 : i32
    %c0_i32_0 = arith.constant 0 : i32
    %c0_i32_1 = arith.constant 0 : i32
    return %c0_i32, %c0_i32_0 : i32, i32
  }
  func.func @transform_8(%arg0: i32) -> (i32, i32) {
    %c0_i32 = arith.constant 0 : i32
    %c0_i32_0 = arith.constant 0 : i32
    %c0_i32_1 = arith.constant 0 : i32
    return %c0_i32, %c0_i32_0 : i32, i32
  }
  func.func @transform_9(%arg0: i32) -> (i32, i32) {
    %c0_i32 = arith.constant 0 : i32
    %c0_i32_0 = arith.constant 0 : i32
    %c0_i32_1 = arith.constant 0 : i32
    return %c0_i32, %c0_i32_0 : i32, i32
  }
  func.func @transform_10(%arg0: i32) -> (i32, i32) {
    %c0_i32 = arith.constant 0 : i32
    %c0_i32_0 = arith.constant 0 : i32
    %c0_i32_1 = arith.constant 0 : i32
    return %c0_i32, %c0_i32_0 : i32, i32
  }
  func.func @transform_11(%arg0: i32) -> (i32, i32) {
    %c0_i32 = arith.constant 0 : i32
    %c0_i32_0 = arith.constant 0 : i32
    %c0_i32_1 = arith.constant 0 : i32
    return %c0_i32, %c0_i32_0 : i32, i32
  }
  func.func @transform_12(%arg0: i32) -> (i32, i32) {
    %c0_i32 = arith.constant 0 : i32
    %c0_i32_0 = arith.constant 0 : i32
    %c0_i32_1 = arith.constant 0 : i32
    return %c0_i32, %c0_i32_0 : i32, i32
  }
  func.func @transform_13(%arg0: i32) -> (i32, i32) {
    %c0_i32 = arith.constant 0 : i32
    %c0_i32_0 = arith.constant 0 : i32
    %c0_i32_1 = arith.constant 0 : i32
    return %c0_i32, %c0_i32_0 : i32, i32
  }
  func.func @transform_14(%arg0: i32) -> (i32, i32) {
    %c0_i32 = arith.constant 0 : i32
    %c0_i32_0 = arith.constant 0 : i32
    %c0_i32_1 = arith.constant 0 : i32
    return %c0_i32, %c0_i32_0 : i32, i32
  }
  func.func @transform_15(%arg0: i32) -> (i32, i32) {
    %c0_i32 = arith.constant 0 : i32
    %c0_i32_0 = arith.constant 0 : i32
    %c0_i32_1 = arith.constant 0 : i32
    return %c0_i32, %c0_i32_0 : i32, i32
  }
  func.func @transform_16(%arg0: i32) -> (i32, i32) {
    %c0_i32 = arith.constant 0 : i32
    %c0_i32_0 = arith.constant 0 : i32
    return %arg0, %c0_i32 : i32, i32
  }
  func.func @transform_17(%arg0: i32) -> (i32, i32) {
    %c0_i32 = arith.constant 0 : i32
    %c0_i32_0 = arith.constant 0 : i32
    return %arg0, %c0_i32 : i32, i32
  }
}

</mosaic_0001>

<bundles_post_ra>
// kernel: tpu_custom_call.1
= control target key start
LH: loop header
LB: loop body
LE: loop exit
PB: predicated region body
PF: predicated region fallthrough
CT: control target
= control target key end

     0   :  { %s5108_s0 = inlined_call_operand.hbm [shape: f32[8,768], index: 0, kind: input, shape index: {}]   ;;  %s5109_s1 = inlined_call_operand.hbm [shape: bf16[768,256], index: 1, kind: input, shape index: {}]   ;;  %s5110_s2 = inlined_call_operand.hbm [shape: bf16[256,128], index: 2, kind: input, shape index: {}]   ;;  %s5111_s3 = inlined_call_operand.hbm [shape: bf16[128,128], index: 3, kind: input, shape index: {}]   ;;  %s5112_s4 = inlined_call_operand.hbm [shape: bf16[128,128], index: 4, kind: input, shape index: {}]   ;;  %s5113_s5 = inlined_call_operand.hbm [shape: bf16[128,128], index: 5, kind: input, shape index: {}]   ;;  %s5114_s6 = inlined_call_operand.hbm [shape: bf16[128,128], index: 6, kind: input, shape index: {}]   ;;  %s5115_s7 = inlined_call_operand.hbm [shape: bf16[128,128], index: 7, kind: input, shape index: {}]   ;;  %s5116_s8 = inlined_call_operand.hbm [shape: bf16[128,128], index: 8, kind: input, shape index: {}]   ;;  %s5117_s9 = inlined_call_operand.hbm [shape: bf16[128,128], index: 9, kind: input, shape index: {}]   ;;  %s5118_s10 = inlined_call_operand.hbm [shape: bf16[128,128], index: 10, kind: input, shape index: {}]   ;;  %s5119_s11 = inlined_call_operand.hbm [shape: bf16[128,128], index: 11, kind: input, shape index: {}]   ;;  %s5120_s12 = inlined_call_operand.hbm [shape: bf16[128,128], index: 12, kind: input, shape index: {}]   ;;  %s5121_s13 = inlined_call_operand.hbm [shape: bf16[128,256], index: 13, kind: input, shape index: {}]   ;;  %s5122_s14 = inlined_call_operand.hbm [shape: bf16[256,768], index: 14, kind: input, shape index: {}]   ;;  %s5123_s15 = inlined_call_operand.vmem [shape: f32[1,2688], index: 15, kind: input, shape index: {}]   ;;  %s5124_s16 = inlined_call_operand.hbm [shape: f32[8,128], index: 16, kind: output, shape index: {0}]   ;;  %s5125_s17 = inlined_call_operand.hbm [shape: f32[8,768], index: 17, kind: output, shape index: {1}]  }
   0x1   :  { %5126 = sst [smem:[#allocation39_spill]] %s5108_s0 }
   0x2   :  { %5127 = sst [smem:[#allocation40_spill]] %s5109_s1 }
   0x3   :  { %23 = vsyncpa [#allocation3], 0 }
   0x4   :  { %24 = vsyncpa [#allocation6], 0 }
   0x5   :  { %25 = vsyncpa [#allocation9], 0 }
   0x6   :  { %26 = vsyncpa [#allocation12], 0 }
   0x7   :  { %27 = vsyncpa [#allocation15], 0 }
   0x8   :  { %28 = vsyncpa [#allocation18], 0 }
   0x9   :  { %29 = vsyncpa [#allocation21], 0 }
   0xa   :  { %30 = vsyncpa [#allocation24], 0 }
   0xb   :  { %31 = vsyncpa [#allocation4], 0 }
   0xc   :  { %32 = vsyncpa [#allocation28], 0  ;;  %s4737_s24 = smov [#allocation5]  }
   0xd   :  { %s48_s25 = sshll.u32 %s4737_s24, 4  ;;  %s49_s25 = int_to_ptr.vmem [resolvable:$true] %s48_s25 }
   0xe   :  { %s4385_s26 = scalar_lea.vmem %s49_s25, 12288  ;;  %p4390_p1 = scmp.lt.s32.totalorder %s49_s25, %s49_s25 }
   0xf   :  { %p4386_p0 = scmp.ne.s32.totalorder %s49_s25, %s4385_s26  ;;  %p4391_p2 = scmp.lt.s32.totalorder %s4385_s26, %s4385_s26 }
  0x11   :  { %p4392_p3 = por %p4391_p2, %p4390_p1 }
  0x13   :  { %p4393_p4 = pnand %p4392_p3, %p4386_p0 }
  0x15   :  { %4396 = shalt.err (!%p4393_p4)
}
  0x16   :  { %s4738_s27 = smov 128   ;;  %s4739_s28 = smov 8  }
  0x17   :  { %s5128_s30 = sld [smem:[#allocation40_spill]]  ;;  %s4740_s18 = smov [#allocation8]  }
  0x18   :  { %s72_s19 = sshll.u32 %s4740_s18, 4  ;;  %s4741_s1 = smov [#allocation11]   ;;  %s73_s19 = int_to_ptr.vmem [resolvable:$true] %s72_s19 }
  0x19   :  { %s96_s20 = sshll.u32 %s4741_s1, 4  ;;  %s4405_s21 = scalar_lea.vmem %s73_s19, 1024  ;;  %s97_s20 = int_to_ptr.vmem [resolvable:$true] %s96_s20 }
  0x1a   :  { %p4406_p5 = scmp.ne.s32.totalorder %s73_s19, %s4405_s21  ;;  %p4410_p6 = scmp.lt.s32.totalorder %s73_s19, %s73_s19 }
  0x1b   :  { %p4411_p7 = scmp.lt.s32.totalorder %s4405_s21, %s4405_s21 }
  0x1d   :  { %54 = dma.hbm_to_vmem [thread:$0]  %s5128_s30, 12288, %s49_s25, [#allocation6], %s4738_s27, %s4738_s27, %s4739_s28  }
  0x1e   :  { %p4412_p8 = por %p4411_p7, %p4410_p6 }
  0x20   :  { %p4413_p9 = pnand %p4412_p8, %p4406_p5 }
  0x22   :  { %4416 = shalt.err (!%p4413_p9)
}
  0x23   :  { %s4742_s22 = smov 64   ;;  %s4743_s23 = smov 4  }
  0x24   :  { %78 = dma.hbm_to_vmem [thread:$0]  %s5111_s3, 1024, %s73_s19, [#allocation9], %s4742_s22, %s4742_s22, %s4743_s23  }
  0x25   :  { %s4425_s25 = scalar_lea.vmem %s97_s20, 1024  ;;  %p4430_p11 = scmp.lt.s32.totalorder %s97_s20, %s97_s20 }
  0x26   :  { %p4426_p10 = scmp.ne.s32.totalorder %s97_s20, %s4425_s25  ;;  %p4431_p12 = scmp.lt.s32.totalorder %s4425_s25, %s4425_s25 }
  0x28   :  { %p4432_p13 = por %p4431_p12, %p4430_p11 }
  0x2a   :  { %p4433_p0 = pnand %p4432_p13, %p4426_p10 }
  0x2c   :  { %4436 = shalt.err (!%p4433_p0)
}
  0x2d   :  { %102 = dma.hbm_to_vmem [thread:$0]  %s5113_s5, 1024, %s97_s20, [#allocation12], %s4742_s22, %s4742_s22, %s4743_s23  }
  0x2e   :  { %s4744_s30 = smov [#allocation14]   ;;  %s4745_s1 = smov [#allocation17]  }
  0x2f   :  { %s120_s18 = sshll.u32 %s4744_s30, 4  ;;  %s144_s3 = sshll.u32 %s4745_s1, 4  ;;  %s121_s18 = int_to_ptr.vmem [resolvable:$true] %s120_s18  ;;  %s145_s3 = int_to_ptr.vmem [resolvable:$true] %s144_s3 }
  0x30   :  { %s4445_s19 = scalar_lea.vmem %s121_s18, 1024  ;;  %p4450_p2 = scmp.lt.s32.totalorder %s121_s18, %s121_s18 }
  0x31   :  { %p4446_p1 = scmp.ne.s32.totalorder %s121_s18, %s4445_s19  ;;  %p4451_p3 = scmp.lt.s32.totalorder %s4445_s19, %s4445_s19 }
  0x33   :  { %p4452_p4 = por %p4451_p3, %p4450_p2 }
  0x35   :  { %p4453_p5 = pnand %p4452_p4, %p4446_p1 }
  0x37   :  { %4456 = shalt.err (!%p4453_p5)
}
  0x38   :  { %126 = dma.hbm_to_vmem [thread:$0]  %s5115_s7, 1024, %s121_s18, [#allocation15], %s4742_s22, %s4742_s22, %s4743_s23  }
  0x39   :  { %s4465_s5 = scalar_lea.vmem %s145_s3, 1024  ;;  %p4470_p7 = scmp.lt.s32.totalorder %s145_s3, %s145_s3 }
  0x3a   :  { %p4466_p6 = scmp.ne.s32.totalorder %s145_s3, %s4465_s5  ;;  %p4471_p8 = scmp.lt.s32.totalorder %s4465_s5, %s4465_s5 }
  0x3c   :  { %p4472_p9 = por %p4471_p8, %p4470_p7 }
  0x3e   :  { %p4473_p10 = pnand %p4472_p9, %p4466_p6 }
  0x40   :  { %4476 = shalt.err (!%p4473_p10)
}
  0x41   :  { %150 = dma.hbm_to_vmem [thread:$0]  %s5117_s9, 1024, %s145_s3, [#allocation18], %s4742_s22, %s4742_s22, %s4743_s23  }
  0x42   :  { %s4746_s25 = smov [#allocation20]   ;;  %s4747_s0 = smov [#allocation23]  }
  0x43   :  { %s168_s29 = sshll.u32 %s4746_s25, 4  ;;  %s192_s7 = sshll.u32 %s4747_s0, 4  ;;  %s169_s29 = int_to_ptr.vmem [resolvable:$true] %s168_s29  ;;  %s193_s7 = int_to_ptr.vmem [resolvable:$true] %s192_s7 }
  0x44   :  { %s4485_s30 = scalar_lea.vmem %s169_s29, 1024  ;;  %p4490_p12 = scmp.lt.s32.totalorder %s169_s29, %s169_s29 }
  0x45   :  { %p4486_p11 = scmp.ne.s32.totalorder %s169_s29, %s4485_s30  ;;  %p4491_p13 = scmp.lt.s32.totalorder %s4485_s30, %s4485_s30 }
  0x47   :  { %p4492_p0 = por %p4491_p13, %p4490_p12 }
  0x49   :  { %p4493_p1 = pnand %p4492_p0, %p4486_p11 }
  0x4b   :  { %4496 = shalt.err (!%p4493_p1)
}
  0x4c   :  { %174 = dma.hbm_to_vmem [thread:$0]  %s5119_s11, 1024, %s169_s29, [#allocation21], %s4742_s22, %s4742_s22, %s4743_s23  }
  0x4d   :  { %s4505_s9 = scalar_lea.vmem %s193_s7, 2048  ;;  %p4510_p3 = scmp.lt.s32.totalorder %s193_s7, %s193_s7 }
  0x4e   :  { %p4506_p2 = scmp.ne.s32.totalorder %s193_s7, %s4505_s9  ;;  %p4511_p4 = scmp.lt.s32.totalorder %s4505_s9, %s4505_s9 }
  0x50   :  { %p4512_p5 = por %p4511_p4, %p4510_p3 }
  0x52   :  { %p4513_p6 = pnand %p4512_p5, %p4506_p2 }
  0x54   :  { %4516 = shalt.err (!%p4513_p6)
}
  0x55   :  { %198 = dma.hbm_to_vmem [thread:$0]  %s5121_s13, 2048, %s193_s7, [#allocation24], %s4738_s27, %s4738_s27, %s4739_s28  }
  0x56   :  { %s4748_s21 = smov [#allocation2]   ;;  %s4749_s5 = smov [#allocation7]  }
  0x57   :  { %s39_s24 = sshll.u32 %s4748_s21, 4  ;;  %s60_s11 = sshll.u32 %s4749_s5, 4  ;;  %s40_s24 = int_to_ptr.vmem [resolvable:$true] %s39_s24  ;;  %s61_s11 = int_to_ptr.vmem [resolvable:$true] %s60_s11 }
  0x58   :  { %s4525_s20 = scalar_lea.vmem %s40_s24, 768  ;;  %p4530_p8 = scmp.lt.s32.totalorder %s40_s24, %s40_s24 }
  0x59   :  { %p4526_p7 = scmp.ne.s32.totalorder %s40_s24, %s4525_s20  ;;  %p4531_p9 = scmp.lt.s32.totalorder %s4525_s20, %s4525_s20 }
  0x5b   :  { %p4532_p10 = por %p4531_p9, %p4530_p8 }
  0x5d   :  { %p4533_p11 = pnand %p4532_p10, %p4526_p7 }
  0x5f   :  { %4536 = shalt.err (!%p4533_p11)
}
  0x60   :  { %s5129_s29 = sld [smem:[#allocation39_spill]]  ;;  %s4545_s0 = scalar_lea.vmem %s61_s11, 2048 }
  0x61   :  { %p4546_p12 = scmp.ne.s32.totalorder %s61_s11, %s4545_s0  ;;  %p4550_p13 = scmp.lt.s32.totalorder %s61_s11, %s61_s11 }
  0x62   :  { %p4551_p0 = scmp.lt.s32.totalorder %s4545_s0, %s4545_s0 }
  0x64   :  { %p4552_p1 = por %p4551_p0, %p4550_p13 }
  0x66   :  { %42 = dma.hbm_to_vmem [thread:$0]  %s5129_s29, 768, %s40_s24, [#allocation3]  }
  0x67   :  { %p4553_p2 = pnand %p4552_p1, %p4546_p12 }
  0x69   :  { %4556 = shalt.err (!%p4553_p2)
}
  0x6a   :  { %66 = dma.hbm_to_vmem [thread:$0]  %s5110_s2, 2048, %s61_s11, [#allocation6], %s4742_s22, %s4742_s22, %s4743_s23  }
  0x6b   :  { %s4750_s28 = smov [#allocation10]   ;;  %s4751_s30 = smov [#allocation13]  }
  0x6c   :  { %s84_s7 = sshll.u32 %s4750_s28, 4  ;;  %s108_s18 = sshll.u32 %s4751_s30, 4  ;;  %s85_s7 = int_to_ptr.vmem [resolvable:$true] %s84_s7  ;;  %s109_s18 = int_to_ptr.vmem [resolvable:$true] %s108_s18 }
  0x6d   :  { %s4565_s1 = scalar_lea.vmem %s85_s7, 1024  ;;  %p4570_p4 = scmp.lt.s32.totalorder %s85_s7, %s85_s7 }
  0x6e   :  { %p4566_p3 = scmp.ne.s32.totalorder %s85_s7, %s4565_s1  ;;  %p4571_p5 = scmp.lt.s32.totalorder %s4565_s1, %s4565_s1 }
  0x70   :  { %p4572_p6 = por %p4571_p5, %p4570_p4 }
  0x72   :  { %p4573_p7 = pnand %p4572_p6, %p4566_p3 }
  0x74   :  { %4576 = shalt.err (!%p4573_p7)
}
  0x75   :  { %90 = dma.hbm_to_vmem [thread:$0]  %s5112_s4, 1024, %s85_s7, [#allocation9], %s4742_s22, %s4742_s22, %s4743_s23  }
  0x76   :  { %s4585_s2 = scalar_lea.vmem %s109_s18, 1024  ;;  %p4590_p9 = scmp.lt.s32.totalorder %s109_s18, %s109_s18 }
  0x77   :  { %p4586_p8 = scmp.ne.s32.totalorder %s109_s18, %s4585_s2  ;;  %p4591_p10 = scmp.lt.s32.totalorder %s4585_s2, %s4585_s2 }
  0x79   :  { %p4592_p11 = por %p4591_p10, %p4590_p9 }
  0x7b   :  { %p4593_p12 = pnand %p4592_p11, %p4586_p8 }
  0x7d   :  { %4596 = shalt.err (!%p4593_p12)
}
  0x7e   :  { %114 = dma.hbm_to_vmem [thread:$0]  %s5114_s6, 1024, %s109_s18, [#allocation12], %s4742_s22, %s4742_s22, %s4743_s23  }
  0x7f   :  { %s4752_s24 = smov [#allocation16]   ;;  %s4753_s11 = smov [#allocation19]  }
  0x80   :  { %s132_s5 = sshll.u32 %s4752_s24, 4  ;;  %s156_s4 = sshll.u32 %s4753_s11, 4  ;;  %s133_s5 = int_to_ptr.vmem [resolvable:$true] %s132_s5  ;;  %s157_s4 = int_to_ptr.vmem [resolvable:$true] %s156_s4 }
  0x81   :  { %s4605_s20 = scalar_lea.vmem %s133_s5, 1024  ;;  %p4610_p0 = scmp.lt.s32.totalorder %s133_s5, %s133_s5 }
  0x82   :  { %p4606_p13 = scmp.ne.s32.totalorder %s133_s5, %s4605_s20  ;;  %p4611_p1 = scmp.lt.s32.totalorder %s4605_s20, %s4605_s20 }
  0x84   :  { %p4612_p2 = por %p4611_p1, %p4610_p0 }
  0x86   :  { %p4613_p3 = pnand %p4612_p2, %p4606_p13 }
  0x88   :  { %4616 = shalt.err (!%p4613_p3)
}
  0x89   :  { %138 = dma.hbm_to_vmem [thread:$0]  %s5116_s8, 1024, %s133_s5, [#allocation15], %s4742_s22, %s4742_s22, %s4743_s23  }
  0x8a   :  { %s4625_s6 = scalar_lea.vmem %s157_s4, 1024  ;;  %p4630_p5 = scmp.lt.s32.totalorder %s157_s4, %s157_s4 }
  0x8b   :  { %p4626_p4 = scmp.ne.s32.totalorder %s157_s4, %s4625_s6  ;;  %p4631_p6 = scmp.lt.s32.totalorder %s4625_s6, %s4625_s6 }
  0x8d   :  { %p4632_p7 = por %p4631_p6, %p4630_p5 }
  0x8f   :  { %p4633_p8 = pnand %p4632_p7, %p4626_p4 }
  0x91   :  { %4636 = shalt.err (!%p4633_p8)
}
  0x92   :  { %162 = dma.hbm_to_vmem [thread:$0]  %s5118_s10, 1024, %s157_s4, [#allocation18], %s4742_s22, %s4742_s22, %s4743_s23  }
  0x93   :  { %s4754_s13 = smov [#allocation22]   ;;  %s4755_s28 = smov [#allocation25]  }
  0x94   :  { %s180_s27 = sshll.u32 %s4754_s13, 4  ;;  %s204_s8 = sshll.u32 %s4755_s28, 4  ;;  %s181_s27 = int_to_ptr.vmem [resolvable:$true] %s180_s27  ;;  %s205_s8 = int_to_ptr.vmem [resolvable:$true] %s204_s8 }
  0x95   :  { %s4645_s7 = scalar_lea.vmem %s181_s27, 1024  ;;  %p4650_p10 = scmp.lt.s32.totalorder %s181_s27, %s181_s27 }
  0x96   :  { %p4646_p9 = scmp.ne.s32.totalorder %s181_s27, %s4645_s7  ;;  %p4651_p11 = scmp.lt.s32.totalorder %s4645_s7, %s4645_s7 }
  0x98   :  { %p4652_p12 = por %p4651_p11, %p4650_p10 }
  0x9a   :  { %p4653_p13 = pnand %p4652_p12, %p4646_p9 }
  0x9c   :  { %4656 = shalt.err (!%p4653_p13)
}
  0x9d   :  { %186 = dma.hbm_to_vmem [thread:$0]  %s5120_s12, 1024, %s181_s27, [#allocation21], %s4742_s22, %s4742_s22, %s4743_s23  }
  0x9e   :  { %s4665_s10 = scalar_lea.vmem %s205_s8, 12288  ;;  %p4670_p1 = scmp.lt.s32.totalorder %s205_s8, %s205_s8 }
  0x9f   :  { %p4666_p0 = scmp.ne.s32.totalorder %s205_s8, %s4665_s10  ;;  %p4671_p2 = scmp.lt.s32.totalorder %s4665_s10, %s4665_s10 }
  0xa1   :  { %p4672_p3 = por %p4671_p2, %p4670_p1 }
  0xa3   :  { %p4673_p4 = pnand %p4672_p3, %p4666_p0 }
  0xa5   :  { %4676 = shalt.err (!%p4673_p4)
}
  0xa6   :  { %s4756_s1 = smov 384   ;;  %s4757_s9 = smov 24  }
  0xa7   :  { %210 = dma.hbm_to_vmem [thread:$0]  %s5122_s14, 12288, %s205_s8, [#allocation24], %s4756_s1, %s4756_s1, %s4757_s9  }
  0xa8   :  { %4717 = dma.done.wait [#allocation3], 768  }
  0xa9   :  { %4718 = vsyncadd [#allocation3], 4294966528 }
  0xaa   :  { %4719 = dma.done.wait [#allocation6], 14336  }
  0xab   :  { %4720 = vsyncadd [#allocation6], 4294952960 }
  0xac   :  { %4721 = dma.done.wait [#allocation9], 2048  }
  0xad   :  { %4722 = vsyncadd [#allocation9], 4294965248 }
  0xae   :  { %4723 = dma.done.wait [#allocation12], 2048  }
  0xaf   :  { %4724 = vsyncadd [#allocation12], 4294965248 }
  0xb0   :  { %4725 = dma.done.wait [#allocation15], 2048  }
  0xb1   :  { %4726 = vsyncadd [#allocation15], 4294965248 }
  0xb2   :  { %4727 = dma.done.wait [#allocation18], 2048  }
  0xb3   :  { %4728 = vsyncadd [#allocation18], 4294965248 }
  0xb4   :  { %4729 = dma.done.wait [#allocation21], 2048  }
  0xb5   :  { %4730 = vsyncadd [#allocation21], 4294965248 }
  0xb6   :  { %4731 = dma.done.wait [#allocation24], 14336  }
  0xb7   :  { %4732 = vsyncadd [#allocation24], 4294952960  ;;  %v3915_v0 = vld [vmem:[#allocation5 + $0x74] ss:$8 sps:$4 sm:$0xff]   ;;  %v3917_v1 = vld [vmem:[#allocation5 + $0x70] ss:$8 sps:$4 sm:$0xff]  }
  0xb8   :  { %859 = vmatprep.subr.bf16.mxu0 %v3915_v0  ;;  %v3918_v2 = vld [vmem:[#allocation5 + $0x174] ss:$8 sps:$4 sm:$0xff]   ;;  %v3920_v3 = vld [vmem:[#allocation5 + $0x170] ss:$8 sps:$4 sm:$0xff]   ;;  %v3921_v4 = vld [vmem:[#allocation5 + $0x64] ss:$8 sps:$4 sm:$0xff]  }
  0xb9   :  { %860 = vmatpush1.bf16.msra.mxu0 %v3917_v1  ;;  %v3923_v5 = vld [vmem:[#allocation5 + $0x60] ss:$8 sps:$4 sm:$0xff]   ;;  %900 = vmatprep.subr.bf16.mxu1 %v3918_v2  ;;  %v3924_v6 = vld [vmem:[#allocation5 + $0x164] ss:$8 sps:$4 sm:$0xff]   ;;  %v3927_v8 = vld [vmem:[#allocation5 + $0x54] ss:$8 sps:$4 sm:$0xff]  }
  0xba   :  { %901 = vmatpush1.bf16.msra.mxu1 %v3920_v3  ;;  %861 = vmatprep.subr.bf16.mxu0 %v3921_v4  ;;  %v3926_v7 = vld [vmem:[#allocation5 + $0x160] ss:$8 sps:$4 sm:$0xff]   ;;  %v3929_v9 = vld [vmem:[#allocation5 + $0x50] ss:$8 sps:$4 sm:$0xff]   ;;  %v3930_v10 = vld [vmem:[#allocation5 + $0x154] ss:$8 sps:$4 sm:$0xff]  }
  0xbb   :  { %902 = vmatprep.subr.bf16.mxu1 %v3924_v6  ;;  %v3933_v11 = vld [vmem:[#allocation5 + $0x44] ss:$8 sps:$4 sm:$0xff]   ;;  %v3932_v12 = vld [vmem:[#allocation5 + $0x150] ss:$8 sps:$4 sm:$0xff]   ;;  %v3935_v14 = vld [vmem:[#allocation5 + $0x40] ss:$8 sps:$4 sm:$0xff]  }
  0xbc   :  { %v3936_v13 = vld [vmem:[#allocation5 + $0x144] ss:$8 sps:$4 sm:$0xff]   ;;  %v3939_v15 = vld [vmem:[#allocation5 + $0x34] ss:$8 sps:$4 sm:$0xff]   ;;  %v3938_v16 = vld [vmem:[#allocation5 + $0x140] ss:$8 sps:$4 sm:$0xff]  }
  0xbd   :  { %862 = vmatpush1.bf16.msra.mxu0 %v3923_v5  ;;  %v3942_v17 = vld [vmem:[#allocation5 + $0x134] ss:$8 sps:$4 sm:$0xff]   ;;  %v3941_v18 = vld [vmem:[#allocation5 + $0x30] ss:$8 sps:$4 sm:$0xff]   ;;  %v3945_v19 = vld [vmem:[#allocation5 + $0x24] ss:$8 sps:$4 sm:$0xff]  }
  0xbe   :  { %863 = vmatprep.subr.bf16.mxu0 %v3927_v8  ;;  %903 = vmatpush1.bf16.msra.mxu1 %v3926_v7  ;;  %v3944_v20 = vld [vmem:[#allocation5 + $0x130] ss:$8 sps:$4 sm:$0xff]   ;;  %v3948_v21 = vld [vmem:[#allocation5 + $0x124] ss:$8 sps:$4 sm:$0xff]   ;;  %v3947_v22 = vld [vmem:[#allocation5 + $0x20] ss:$8 sps:$4 sm:$0xff]  }
  0xbf   :  { %904 = vmatprep.subr.bf16.mxu1 %v3930_v10  ;;  %v3951_v23 = vld [vmem:[#allocation5 + $0x14] ss:$8 sps:$4 sm:$0xff]   ;;  %v3950_v24 = vld [vmem:[#allocation5 + $0x120] ss:$8 sps:$4 sm:$0xff]   ;;  %v3953_v26 = vld [vmem:[#allocation5 + $0x10] ss:$8 sps:$4 sm:$0xff]  }
  0xc0   :  { %v3954_v25 = vld [vmem:[#allocation5 + $0x114] ss:$8 sps:$4 sm:$0xff]   ;;  %v3957_v27 = vld [vmem:[#allocation5 + $0x4] ss:$8 sps:$4 sm:$0xff]   ;;  %v3956_v28 = vld [vmem:[#allocation5 + $0x110] ss:$8 sps:$4 sm:$0xff]  }
  0xc1   :  { %864 = vmatpush1.bf16.msra.mxu0 %v3929_v9  ;;  %v3960_v29 = vld [vmem:[#allocation5 + $0x104] ss:$8 sps:$4 sm:$0xff]   ;;  %v3959_v30 = vld [vmem:[#allocation5] ss:$8 sps:$4 sm:$0xff]   ;;  %v3963_v31 = vld [vmem:[#allocation5 + $0xf4] ss:$8 sps:$4 sm:$0xff]  }
  0xc2   :  { %865 = vmatprep.subr.bf16.mxu0 %v3933_v11  ;;  %905 = vmatpush1.bf16.msra.mxu1 %v3932_v12  ;;  %v3962_v32 = vld [vmem:[#allocation5 + $0x100] ss:$8 sps:$4 sm:$0xff]   ;;  %v3966_v33 = vld [vmem:[#allocation5 + $0x1f4] ss:$8 sps:$4 sm:$0xff]   ;;  %v3965_v34 = vld [vmem:[#allocation5 + $0xf0] ss:$8 sps:$4 sm:$0xff]  }
  0xc3   :  { %906 = vmatprep.subr.bf16.mxu1 %v3936_v13  ;;  %v3969_v35 = vld [vmem:[#allocation5 + $0xe4] ss:$8 sps:$4 sm:$0xff]   ;;  %v3968_v36 = vld [vmem:[#allocation5 + $0x1f0] ss:$8 sps:$4 sm:$0xff]   ;;  %v3971_v38 = vld [vmem:[#allocation5 + $0xe0] ss:$8 sps:$4 sm:$0xff]  }
  0xc4   :  { %v3972_v37 = vld [vmem:[#allocation5 + $0x1e4] ss:$8 sps:$4 sm:$0xff]   ;;  %v3975_v39 = vld [vmem:[#allocation5 + $0xd4] ss:$8 sps:$4 sm:$0xff]   ;;  %v3974_v40 = vld [vmem:[#allocation5 + $0x1e0] ss:$8 sps:$4 sm:$0xff]  }
  0xc5   :  { %866 = vmatpush1.bf16.msra.mxu0 %v3935_v14  ;;  %v3978_v41 = vld [vmem:[#allocation5 + $0x1d4] ss:$8 sps:$4 sm:$0xff]   ;;  %v3977_v42 = vld [vmem:[#allocation5 + $0xd0] ss:$8 sps:$4 sm:$0xff]   ;;  %v3981_v43 = vld [vmem:[#allocation5 + $0xc4] ss:$8 sps:$4 sm:$0xff]  }
  0xc6   :  { %867 = vmatprep.subr.bf16.mxu0 %v3939_v15  ;;  %907 = vmatpush1.bf16.msra.mxu1 %v3938_v16  ;;  %v3980_v44 = vld [vmem:[#allocation5 + $0x1d0] ss:$8 sps:$4 sm:$0xff]   ;;  %v3984_v45 = vld [vmem:[#allocation5 + $0x1c4] ss:$8 sps:$4 sm:$0xff]   ;;  %v3983_v47 = vld [vmem:[#allocation5 + $0xc0] ss:$8 sps:$4 sm:$0xff]  }
  0xc7   :  { %908 = vmatprep.subr.bf16.mxu1 %v3942_v17  ;;  %v260_v46 = vld [vmem:[#allocation2 + $0x8] sm:$0xff]  ;;  %v262_v50 = vld [vmem:[#allocation2 + $0x18] sm:$0xff]  ;;  %v259_v4 = vld [vmem:[#allocation2] sm:$0xff]  ;;  %vm4759_vm0 = vmmov 0   ;;  %s4761_s3 = smov [#allocation26]  }
  0xc8   :  { %v266_v48 = vpack.c.bf16 %v260_v46, %v260_v46  ;;  %v3987_v49 = vld [vmem:[#allocation5 + $0xb4] ss:$8 sps:$4 sm:$0xff]   ;;  %v3986_v51 = vld [vmem:[#allocation5 + $0x1c0] ss:$8 sps:$4 sm:$0xff]   ;;  %v268_v52 = vpack.c.bf16 %v262_v50, %v262_v50  ;;  %v3989_v54 = vld [vmem:[#allocation5 + $0xb0] ss:$8 sps:$4 sm:$0xff]   ;;  %v265_v7 = vpack.c.bf16 %v259_v4, %v259_v4 }
  0xc9   :  { %868 = vmatpush1.bf16.msra.mxu0 %v3941_v18  ;;  %v3990_v53 = vld [vmem:[#allocation5 + $0x1b4] ss:$8 sps:$4 sm:$0xff]   ;;  %v3993_v55 = vld [vmem:[#allocation5 + $0xa4] ss:$8 sps:$4 sm:$0xff]   ;;  %v3992_v56 = vld [vmem:[#allocation5 + $0x1b0] ss:$8 sps:$4 sm:$0xff]  }
  0xca   :  { %869 = vmatprep.subr.bf16.mxu0 %v3945_v19  ;;  %909 = vmatpush1.bf16.msra.mxu1 %v3944_v20  ;;  %v3996_v57 = vld [vmem:[#allocation5 + $0x1a4] ss:$8 sps:$4 sm:$0xff]   ;;  %v3995_v58 = vld [vmem:[#allocation5 + $0xa0] ss:$8 sps:$4 sm:$0xff]   ;;  %v3999_v59 = vld [vmem:[#allocation5 + $0x94] ss:$8 sps:$4 sm:$0xff]  }
  0xcb   :  { %910 = vmatprep.subr.bf16.mxu1 %v3948_v21  ;;  %891 = vmatprep.mubr.bf16.mxu0 %v266_v48  ;;  %v3998_v60 = vld [vmem:[#allocation5 + $0x1a0] ss:$8 sps:$4 sm:$0xff]   ;;  %v4002_v61 = vld [vmem:[#allocation5 + $0x194] ss:$8 sps:$4 sm:$0xff]   ;;  %v4001_v62 = vld [vmem:[#allocation5 + $0x90] ss:$8 sps:$4 sm:$0xff]  }
  0xcc   :  { %932 = vmatprep.mubr.bf16.mxu1 %v268_v52  ;;  %v4005_v63 = vld [vmem:[#allocation5 + $0x84] ss:$8 sps:$4 sm:$0xff]   ;;  %v4004_v0 = vld [vmem:[#allocation5 + $0x190] ss:$8 sps:$4 sm:$0xff]   ;;  %v4007_v1 = vld [vmem:[#allocation5 + $0x80] ss:$8 sps:$4 sm:$0xff]  }
  0xcd   :  { %870 = vmatpush1.bf16.msra.mxu0 %v3947_v22  ;;  %v4008_v2 = vld [vmem:[#allocation5 + $0x184] ss:$8 sps:$4 sm:$0xff]   ;;  %v4010_v3 = vld [vmem:[#allocation5 + $0x180] ss:$8 sps:$4 sm:$0xff]   ;;  %v4013_v5 = vld [vmem:[#allocation5 + $0x274] ss:$8 sps:$4 sm:$0xff]  }
  0xce   :  { %871 = vmatprep.subr.bf16.mxu0 %v3951_v23  ;;  %911 = vmatpush1.bf16.msra.mxu1 %v3950_v24  ;;  %v261_v6 = vld [vmem:[#allocation2 + $0x10] sm:$0xff]  ;;  %v4011_v8 = vld [vmem:[#allocation5 + $0x270] ss:$8 sps:$4 sm:$0xff]   ;;  %v4019_v13 = vld [vmem:[#allocation5 + $0x254] ss:$8 sps:$4 sm:$0xff]   ;;  %s3226_s2 = sshll.u32 %s4761_s3, 4  ;;  %s3227_s2 = int_to_ptr.vmem [resolvable:$true] %s3226_s2 }
  0xcf   :  { %912 = vmatprep.subr.bf16.mxu1 %v3954_v25  ;;  %v267_v9 = vpack.c.bf16 %v261_v6, %v261_v6  ;;  %v4016_v10 = vld [vmem:[#allocation5 + $0x264] ss:$8 sps:$4 sm:$0xff]   ;;  %v4014_v11 = vld [vmem:[#allocation5 + $0x260] ss:$8 sps:$4 sm:$0xff]   ;;  %v264_v12 = vld [vmem:[#allocation2 + $0x28] sm:$0xff]  ;;  %s4677_s12 = scalar_lea.vmem %s3227_s2, 128  ;;  %p4682_p6 = scmp.lt.s32.totalorder %s3227_s2, %s3227_s2 }
  0xd0   :  { %v270_v14 = vpack.c.bf16 %v264_v12, %v264_v12  ;;  %v4017_v15 = vld [vmem:[#allocation5 + $0x250] ss:$8 sps:$4 sm:$0xff]   ;;  %v4022_v16 = vld [vmem:[#allocation5 + $0x244] ss:$8 sps:$4 sm:$0xff]   ;;  %v4020_v17 = vld [vmem:[#allocation5 + $0x240] ss:$8 sps:$4 sm:$0xff]   ;;  %p4678_p5 = scmp.ne.s32.totalorder %s3227_s2, %s4677_s12  ;;  %p4683_p7 = scmp.lt.s32.totalorder %s4677_s12, %s4677_s12 }
  0xd1   :  { %872 = vmatpush1.bf16.msra.mxu0 %v3953_v26  ;;  %v4025_v18 = vld [vmem:[#allocation5 + $0x234] ss:$8 sps:$4 sm:$0xff]   ;;  %v4023_v19 = vld [vmem:[#allocation5 + $0x230] ss:$8 sps:$4 sm:$0xff]   ;;  %v4028_v20 = vld [vmem:[#allocation5 + $0x224] ss:$8 sps:$4 sm:$0xff]  }
  0xd2   :  { %873 = vmatprep.subr.bf16.mxu0 %v3957_v27  ;;  %913 = vmatpush1.bf16.msra.mxu1 %v3956_v28  ;;  %v4026_v21 = vld [vmem:[#allocation5 + $0x220] ss:$8 sps:$4 sm:$0xff]   ;;  %v4031_v22 = vld [vmem:[#allocation5 + $0x214] ss:$8 sps:$4 sm:$0xff]   ;;  %v4029_v23 = vld [vmem:[#allocation5 + $0x210] ss:$8 sps:$4 sm:$0xff]   ;;  %p4684_p8 = por %p4683_p7, %p4682_p6 }
  0xd3   :  { %914 = vmatprep.subr.bf16.mxu1 %v3960_v29  ;;  %v4034_v24 = vld [vmem:[#allocation5 + $0x204] ss:$8 sps:$4 sm:$0xff]   ;;  %v4032_v25 = vld [vmem:[#allocation5 + $0x200] ss:$8 sps:$4 sm:$0xff]   ;;  %v4037_v26 = vld [vmem:[#allocation5 + $0x2f4] ss:$8 sps:$4 sm:$0xff]  }
  0xd4   :  { %v4035_v27 = vld [vmem:[#allocation5 + $0x2f0] ss:$8 sps:$4 sm:$0xff]   ;;  %v4040_v28 = vld [vmem:[#allocation5 + $0x2e4] ss:$8 sps:$4 sm:$0xff]   ;;  %v4038_v29 = vld [vmem:[#allocation5 + $0x2e0] ss:$8 sps:$4 sm:$0xff]   ;;  %p4685_p9 = pnand %p4684_p8, %p4678_p5 }
  0xd5   :  { %874 = vmatpush1.bf16.msra.mxu0 %v3959_v30  ;;  %v4043_v30 = vld [vmem:[#allocation5 + $0x2d4] ss:$8 sps:$4 sm:$0xff]   ;;  %v4063_v48 = vld [vmem:[#allocation7 + $0x68] sm:$0xff]   ;;  %v4065_v50 = vld [vmem:[#allocation7 + $0x60] sm:$0xff]  }
  0xd6   :  { %875 = vmatprep.subr.bf16.mxu0 %v3963_v31  ;;  %915 = vmatpush1.bf16.msra.mxu1 %v3962_v32  ;;  %v4041_v31 = vld [vmem:[#allocation5 + $0x2d0] ss:$8 sps:$4 sm:$0xff]   ;;  %v4046_v32 = vld [vmem:[#allocation5 + $0x2c4] ss:$8 sps:$4 sm:$0xff]  }
  0xd7   :  { %916 = vmatprep.subr.bf16.mxu1 %v3966_v33  ;;  %v4044_v33 = vld [vmem:[#allocation5 + $0x2c0] ss:$8 sps:$4 sm:$0xff]   ;;  %v4061_v46 = vld [vmem:[#allocation7 + $0x70] sm:$0xff]   ;;  %v4067_v52 = vld [vmem:[#allocation7 + $0x58] sm:$0xff]  }
  0xd9   :  { %876 = vmatpush2.bf16.msra.mxu0 %v3965_v34  ;;  %v4049_v34 = vld [vmem:[#allocation5 + $0x2b4] ss:$8 sps:$4 sm:$0xff]  }
  0xda   :  { %877 = vmatprep.subr.bf16.mxu0 %v3969_v35  ;;  %917 = vmatpush2.bf16.msra.mxu1 %v3968_v36  ;;  %v4047_v35 = vld [vmem:[#allocation5 + $0x2b0] ss:$8 sps:$4 sm:$0xff]   ;;  %v4052_v36 = vld [vmem:[#allocation5 + $0x2a4] ss:$8 sps:$4 sm:$0xff]  }
  0xdb   :  { %918 = vmatprep.subr.bf16.mxu1 %v3972_v37  ;;  %v4050_v37 = vld [vmem:[#allocation5 + $0x2a0] ss:$8 sps:$4 sm:$0xff]  }
  0xdd   :  { %878 = vmatpush2.bf16.msra.mxu0 %v3971_v38  ;;  %v4055_v38 = vld [vmem:[#allocation5 + $0x294] ss:$8 sps:$4 sm:$0xff]  }
  0xde   :  { %879 = vmatprep.subr.bf16.mxu0 %v3975_v39  ;;  %919 = vmatpush2.bf16.msra.mxu1 %v3974_v40  ;;  %v4053_v39 = vld [vmem:[#allocation5 + $0x290] ss:$8 sps:$4 sm:$0xff]   ;;  %v4058_v40 = vld [vmem:[#allocation5 + $0x284] ss:$8 sps:$4 sm:$0xff]  }
  0xdf   :  { %920 = vmatprep.subr.bf16.mxu1 %v3978_v41  ;;  %v4056_v41 = vld [vmem:[#allocation5 + $0x280] ss:$8 sps:$4 sm:$0xff]  }
  0xe1   :  { %880 = vmatpush2.bf16.msra.mxu0 %v3977_v42  ;;  %v263_v42 = vld [vmem:[#allocation2 + $0x20] sm:$0xff] }
  0xe2   :  { %881 = vmatprep.subr.bf16.mxu0 %v3981_v43  ;;  %921 = vmatpush2.bf16.msra.mxu1 %v3980_v44  ;;  %v269_v43 = vpack.c.bf16 %v263_v42, %v263_v42  ;;  %v4059_v44 = vld [vmem:[#allocation7 + $0x78] sm:$0xff]  }
  0xe3   :  { %922 = vmatprep.subr.bf16.mxu1 %v3984_v45  ;;  %v4060_v45 = vld [vmem:[#allocation7 + $0x38] sm:$0xff]  }
  0xe4   :  { %v4083_v42 = vld [vmem:[#allocation10 + $0x38] sm:$0xff]  }
  0xe5   :  { %882 = vmatpush2.bf16.msra.mxu0 %v3983_v47  ;;  %v4062_v47 = vld [vmem:[#allocation7 + $0x30] sm:$0xff]  }
  0xe6   :  { %883 = vmatprep.subr.bf16.mxu0 %v3987_v49  ;;  %923 = vmatpush2.bf16.msra.mxu1 %v3986_v51  ;;  %v4064_v49 = vld [vmem:[#allocation7 + $0x28] sm:$0xff]   ;;  %v4066_v51 = vld [vmem:[#allocation7 + $0x20] sm:$0xff]  }
  0xe7   :  { %924 = vmatprep.subr.bf16.mxu1 %v3990_v53  ;;  %v4068_v53 = vld [vmem:[#allocation7 + $0x18] sm:$0xff]  }
  0xe9   :  { %884 = vmatpush2.bf16.msra.mxu0 %v3989_v54  ;;  %v4069_v54 = vld [vmem:[#allocation7 + $0x50] sm:$0xff]  }
  0xea   :  { %885 = vmatprep.subr.bf16.mxu0 %v3993_v55  ;;  %925 = vmatpush2.bf16.msra.mxu1 %v3992_v56  ;;  %v4070_v55 = vld [vmem:[#allocation7 + $0x10] sm:$0xff]   ;;  %v4071_v56 = vld [vmem:[#allocation7 + $0x48] sm:$0xff]  }
  0xeb   :  { %926 = vmatprep.subr.bf16.mxu1 %v3996_v57  ;;  %v4072_v57 = vld [vmem:[#allocation7 + $0x8] sm:$0xff]  }
  0xed   :  { %886 = vmatpush2.bf16.msra.mxu0 %v3995_v58  ;;  %v4073_v58 = vld [vmem:[#allocation7 + $0x40] sm:$0xff]  }
  0xee   :  { %887 = vmatprep.subr.bf16.mxu0 %v3999_v59  ;;  %927 = vmatpush2.bf16.msra.mxu1 %v3998_v60  ;;  %v4074_v59 = vld [vmem:[#allocation7] sm:$0xff]   ;;  %v4758_v60 = vmov 0.0  }
  0xef   :  { %928 = vmatprep.subr.bf16.mxu1 %v4002_v61 }
  0xf1   :  { %888 = vmatpush2.bf16.msra.mxu0 %v4001_v62 }
  0xf2   :  { %889 = vmatprep.subr.bf16.mxu0 %v4005_v63  ;;  %929 = vmatpush2.bf16.msra.mxu1 %v4004_v0 }
  0xf3   :  { %930 = vmatprep.subr.bf16.mxu1 %v4008_v2 }
  0xf5   :  { %890 = vmatpush2.bf16.msra.mxu0 %v4007_v1 }
  0xf6   :  { %941 = vmatprep.subr.bf16.mxu0 %v4013_v5  ;;  %931 = vmatpush2.bf16.msra.mxu1 %v4010_v3  ;;  %v369_v5 = vlaneseq }
  0xf7   :  { %3577 = vmatprep.subr.bf16.mxu1 %v4059_v44  ;;  %v4084_v44 = vld [vmem:[#allocation10 + $0x30] sm:$0xff]  }
  0xf8   :  { %892 = vmatmul.mubr.bf16.vlgmr.msra.gmra.mxu0 %v265_v7  ;;  %v4939_v6 = vshrl.u32 %v369_v5, 7  ;;  %v4100_v5 = vld [vmem:[#allocation13 + $0x30] sm:$0xff]  }
  0xf9   :  { %942 = vmatpush1.bf16.msra.mxu0 %v4011_v8  ;;  %933 = vmatmul.mubr.bf16.vlgmr.msra.gmra.mxu1 %v267_v9  ;;  %v367_v8 = vld [vmem:[%s5123_s15] sm:$0x3] }
  0xfa   :  { %943 = vmatprep.subr.bf16.mxu0 %v4016_v10  ;;  %973 = vmatprep.mubr.bf16.mxu0 %v270_v14  ;;  %v4942_v7 = vsub.s32 0, %v4939_v6  ;;  %v4948_v9 = vsub.s32 1, %v4939_v6 }
  0xfb   :  { %3578 = vmatpush3.bf16.msra.mxu1 %v4060_v45  ;;  %v4085_v45 = vld [vmem:[#allocation10 + $0x28] sm:$0xff]  }
  0xfc   :  { %3579 = vmatprep.subr.bf16.mxu1 %v4061_v46  ;;  %v372_v10 = vrot.slane %v367_v8, %v4942_v7  ;;  %v4086_v46 = vld [vmem:[#allocation10 + $0x20] sm:$0xff]  }
  0xfd   :  { %944 = vmatpush1.bf16.msra.mxu0 %v4014_v11  ;;  %v376_v11 = vrot.slane %v367_v8, %v4948_v9  ;;  %v4101_v8 = vld [vmem:[#allocation13 + $0x28] sm:$0xff]  }
  0xfe   :  { %945 = vmatprep.subr.bf16.mxu0 %v4019_v13 }
  0xff   :  { %3580 = vmatpush3.bf16.msra.mxu1 %v4062_v47  ;;  %v4087_v47 = vld [vmem:[#allocation10 + $0x18] sm:$0xff]  }
 0x100   :  { %3581 = vmatprep.subr.bf16.mxu1 %v4063_v48  ;;  %v4088_v48 = vld [vmem:[#allocation10 + $0x10] sm:$0xff]  }
 0x101   :  { %946 = vmatpush1.bf16.msra.mxu0 %v4017_v15 }
 0x102   :  { %947 = vmatprep.subr.bf16.mxu0 %v4022_v16 }
 0x103   :  { %3582 = vmatpush3.bf16.msra.mxu1 %v4064_v49  ;;  %v4089_v49 = vld [vmem:[#allocation10 + $0x8] sm:$0xff]  }
 0x104   :  { %3583 = vmatprep.subr.bf16.mxu1 %v4065_v50  ;;  %v4090_v50 = vld [vmem:[#allocation10] sm:$0xff]  }
 0x105   :  { %948 = vmatpush1.bf16.msra.mxu0 %v4020_v17 }
 0x106   :  { %949 = vmatprep.subr.bf16.mxu0 %v4025_v18 }
 0x107   :  { %3584 = vmatpush3.bf16.msra.mxu1 %v4066_v51  ;;  %v3369_v51 = vld [vmem:[%s5123_s15 + $0x3] ss:$0 sm:$0xff] }
 0x108   :  { %3585 = vmatprep.subr.bf16.mxu1 %v4067_v52 }
 0x109   :  { %950 = vmatpush1.bf16.msra.mxu0 %v4023_v19 }
 0x10a   :  { %951 = vmatprep.subr.bf16.mxu0 %v4028_v20 }
 0x10b   :  { %3586 = vmatpush3.bf16.msra.mxu1 %v4068_v53 }
 0x10c   :  { %3587 = vmatprep.subr.bf16.mxu1 %v4069_v54 }
 0x10d   :  { %952 = vmatpush1.bf16.msra.mxu0 %v4026_v21 }
 0x10e   :  { %953 = vmatprep.subr.bf16.mxu0 %v4031_v22 }
 0x10f   :  { %3588 = vmatpush3.bf16.msra.mxu1 %v4070_v55 }
 0x110   :  { %3589 = vmatprep.subr.bf16.mxu1 %v4071_v56 }
 0x111   :  { %954 = vmatpush1.bf16.msra.mxu0 %v4029_v23 }
 0x112   :  { %955 = vmatprep.subr.bf16.mxu0 %v4034_v24 }
 0x113   :  { %3590 = vmatpush3.bf16.msra.mxu1 %v4072_v57 }
 0x114   :  { %3591 = vmatprep.subr.bf16.mxu1 %v4073_v58  ;;  %v4091_v58 = vld [vmem:[#allocation11 + $0x38] sm:$0xff]  }
 0x115   :  { %956 = vmatpush1.bf16.msra.mxu0 %v4032_v25  ;;  %v4075_v25 = vld [vmem:[#allocation8 + $0x38] sm:$0xff]  }
 0x116   :  { %957 = vmatprep.subr.bf16.mxu0 %v4037_v26 }
 0x117   :  { %3592 = vmatpush3.bf16.msra.mxu1 %v4074_v59 }
 0x118   :  { %3689 = vmatprep.subr.bf16.mxu1 %v4758_v60 }
 0x119   :  { %958 = vmatpush2.bf16.msra.mxu0 %v4035_v27  ;;  %v4076_v27 = vld [vmem:[#allocation8 + $0x30] sm:$0xff]  }
 0x11a   :  { %959 = vmatprep.subr.bf16.mxu0 %v4040_v28  ;;  %v4077_v28 = vld [vmem:[#allocation8 + $0x28] sm:$0xff]  }
 0x11d   :  { %960 = vmatpush2.bf16.msra.mxu0 %v4038_v29  ;;  %v4078_v29 = vld [vmem:[#allocation8 + $0x20] sm:$0xff]  }
 0x11e   :  { %961 = vmatprep.subr.bf16.mxu0 %v4043_v30  ;;  %v4079_v30 = vld [vmem:[#allocation8 + $0x18] sm:$0xff]  }
 0x121   :  { %962 = vmatpush2.bf16.msra.mxu0 %v4041_v31  ;;  %v4080_v31 = vld [vmem:[#allocation8 + $0x10] sm:$0xff]  }
 0x122   :  { %963 = vmatprep.subr.bf16.mxu0 %v4046_v32  ;;  %v4081_v32 = vld [vmem:[#allocation8 + $0x8] sm:$0xff]  }
 0x125   :  { %964 = vmatpush2.bf16.msra.mxu0 %v4044_v33  ;;  %v4082_v33 = vld [vmem:[#allocation8] sm:$0xff]  }
 0x126   :  { %965 = vmatprep.subr.bf16.mxu0 %v4049_v34 }
 0x129   :  { %966 = vmatpush2.bf16.msra.mxu0 %v4047_v35  ;;  %v3352_v35 = vld [vmem:[%s5123_s15 + $0x2] ss:$0 sm:$0xff] }
 0x12a   :  { %967 = vmatprep.subr.bf16.mxu0 %v4052_v36 }
 0x12d   :  { %968 = vmatpush2.bf16.msra.mxu0 %v4050_v37 }
 0x12e   :  { %969 = vmatprep.subr.bf16.mxu0 %v4055_v38 }
 0x131   :  { %970 = vmatpush2.bf16.msra.mxu0 %v4053_v39 }
 0x132   :  { %971 = vmatprep.subr.bf16.mxu0 %v4058_v40 }
 0x135   :  { %972 = vmatpush2.bf16.msra.mxu0 %v4056_v41 }
 0x136   :  { %3749 = vmatprep.subr.bf16.mxu0 %v4758_v60 }
 0x138   :  { %974 = vmatmul.mubr.bf16.vlgmr.msra.gmra.mxu0 %v269_v43 }
 0x139   :  { %3765 = vmatprep.mubr.msk.bf16.mxu0 %vm4759_vm0, %v4758_v60 }
 0x1b8   :  { %v893_v61 = vpop.f32.mrf.mxu0 }
 0x1b9   :  { %v934_v63 = vpop.f32.mrf.mxu1  ;;  %v894_v12 = vadd.f32 %v893_v61, %v372_v10  ;;  %v4092_v61 = vld [vmem:[#allocation11 + $0x30] sm:$0xff]  }
 0x1ba   :  { %v895_v62 = vpop.f32.mrf.mxu0  ;;  %v3378_v10 = vld [vmem:[%s5123_s15 + $0x4] ss:$0 sm:$0xff] }
 0x1bb   :  { %v936_v1 = vpop.f32.mrf.mxu1  ;;  %v896_v13 = vadd.f32 %v895_v62, %v376_v11  ;;  %v935_v14 = vadd.f32 %v934_v63, %v894_v12  ;;  %v4093_v62 = vld [vmem:[#allocation11 + $0x28] sm:$0xff]   ;;  %v4094_v63 = vld [vmem:[#allocation11 + $0x20] sm:$0xff]  }
 0x1bc   :  { %v897_v0 = vpop.f32.mrf.mxu0 }
 0x1bd   :  { %v938_v3 = vpop.f32.mrf.mxu1  ;;  %v937_v16 = vadd.f32 %v936_v1, %v896_v13  ;;  %v4095_v0 = vld [vmem:[#allocation11 + $0x18] sm:$0xff]   ;;  %v4096_v1 = vld [vmem:[#allocation11 + $0x10] sm:$0xff]  }
 0x1be   :  { %v898_v2 = vpop.f32.mrf.mxu0  ;;  %v4098_v3 = vld [vmem:[#allocation11] sm:$0xff]  }
 0x1bf   :  { %v939_v4 = vpop.f32.mrf.mxu1  ;;  %v4097_v2 = vld [vmem:[#allocation11 + $0x8] sm:$0xff]  }
 0x1c0   :  { %v4099_v4 = vld [vmem:[#allocation13 + $0x38] sm:$0xff]  }
 0x1c1   :  { %3750 = vmatpush3.bf16.msra.mxu0 %v4099_v4  ;;  %v4127_v4 = vld [vmem:[#allocation17 + $0x18] sm:$0xff]  }
 0x1c2   :  { %3751 = vmatprep.subr.bf16.mxu0 %v4758_v60 }
 0x1c5   :  { %3752 = vmatpush3.bf16.msra.mxu0 %v4100_v5  ;;  %v4128_v5 = vld [vmem:[#allocation17 + $0x10] sm:$0xff]  }
 0x1c6   :  { %3753 = vmatprep.subr.bf16.mxu0 %v4758_v60 }
 0x1c9   :  { %3754 = vmatpush3.bf16.msra.mxu0 %v4101_v8  ;;  %v4129_v8 = vld [vmem:[#allocation17 + $0x8] sm:$0xff]  }
 0x1ca   :  { %3755 = vmatprep.subr.bf16.mxu0 %v4758_v60 }
 0x1f8   :  { %v975_v15 = vpop.f32.mrf.mxu0 }
 0x1f9   :  { %v976_v17 = vadd.f32 %v975_v15, %v935_v14 }
 0x1fa   :  { %v977_v18 = vpop.f32.mrf.mxu0 }
 0x1fb   :  { %v978_v19 = vadd.f32 %v977_v18, %v937_v16  ;;  %4323 = vtanh.f32 %v976_v17  ;;  %v4102_v18 = vld [vmem:[#allocation13 + $0x20] sm:$0xff]  }
 0x1fc   :  { %v979_v20 = vpop.f32.mrf.mxu0  ;;  %3756 = vmatpush3.bf16.msra.mxu0 %v4102_v18 }
 0x1fd   :  { %4325 = vtanh.f32 %v978_v19  ;;  %3757 = vmatprep.subr.bf16.mxu0 %v4758_v60  ;;  %v4103_v19 = vld [vmem:[#allocation13 + $0x18] sm:$0xff]   ;;  %v4104_v20 = vld [vmem:[#allocation13 + $0x10] sm:$0xff]  }
 0x1fe   :  { %v980_v21 = vpop.f32.mrf.mxu0 }
 0x1ff   :  { %v4105_v21 = vld [vmem:[#allocation13 + $0x8] sm:$0xff]  }
 0x200   :  { %3758 = vmatpush3.bf16.msra.mxu0 %v4103_v19 }
 0x201   :  { %3759 = vmatprep.subr.bf16.mxu0 %v4758_v60 }
 0x204   :  { %3760 = vmatpush3.bf16.msra.mxu0 %v4104_v20 }
 0x205   :  { %3761 = vmatprep.subr.bf16.mxu0 %v4758_v60 }
 0x208   :  { %v4324_v22 = vpop.eup %4323  ;;  %3762 = vmatpush3.bf16.msra.mxu0 %v4105_v21 }
 0x209   :  { %v984_v26 = vpack.c.bf16 %v4324_v22, %v4324_v22  ;;  %3763 = vmatprep.subr.bf16.mxu0 %v4758_v60  ;;  %v4106_v22 = vld [vmem:[#allocation13] sm:$0xff]  }
 0x20a   :  { %v4326_v23 = vpop.eup %4325 }
 0x20b   :  { %v985_v24 = vpack.c.bf16 %v4326_v23, %v4326_v23  ;;  %v4107_v23 = vld [vmem:[#allocation14 + $0x38] sm:$0xff]  }
 0x20c   :  { %3764 = vmatpush3.bf16.msra.mxu0 %v4106_v22  ;;  %v4134_v22 = vld [vmem:[#allocation19 + $0x20] sm:$0xff]  }
 0x20d   :  { %1153 = vmatprep.mubr.bf16.mxu1 %v985_v24  ;;  %3789 = vmatprep.subr.bf16.mxu0 %v4758_v60  ;;  %v4108_v24 = vld [vmem:[#allocation14 + $0x30] sm:$0xff]  }
 0x20e   :  { %1154 = vmatmul.mubr.bf16.vlgmr.msra.gmra.mxu1 %v984_v26  ;;  %v3387_v26 = vld [vmem:[%s5123_s15 + $0x5] ss:$0 sm:$0xff] }
 0x20f   :  { %3690 = vmatpush3.bf16.msra.mxu1 %v4075_v25  ;;  %3705 = vmatprep.mubr.msk.bf16.mxu1 %vm4759_vm0, %v4758_v60  ;;  %v4109_v25 = vld [vmem:[#allocation14 + $0x28] sm:$0xff]  }
 0x210   :  { %3691 = vmatprep.subr.bf16.mxu1 %v4758_v60 }
 0x213   :  { %3692 = vmatpush3.bf16.msra.mxu1 %v4076_v27 }
 0x214   :  { %3693 = vmatprep.subr.bf16.mxu1 %v4758_v60 }
 0x217   :  { %3694 = vmatpush3.bf16.msra.mxu1 %v4077_v28 }
 0x218   :  { %3695 = vmatprep.subr.bf16.mxu1 %v4758_v60 }
 0x21b   :  { %3696 = vmatpush3.bf16.msra.mxu1 %v4078_v29 }
 0x21c   :  { %3697 = vmatprep.subr.bf16.mxu1 %v4758_v60 }
 0x21f   :  { %3698 = vmatpush3.bf16.msra.mxu1 %v4079_v30 }
 0x220   :  { %3699 = vmatprep.subr.bf16.mxu1 %v4758_v60 }
 0x223   :  { %3700 = vmatpush3.bf16.msra.mxu1 %v4080_v31 }
 0x224   :  { %3701 = vmatprep.subr.bf16.mxu1 %v4758_v60 }
 0x227   :  { %3702 = vmatpush3.bf16.msra.mxu1 %v4081_v32 }
 0x228   :  { %3703 = vmatprep.subr.bf16.mxu1 %v4758_v60 }
 0x22b   :  { %3704 = vmatpush3.bf16.msra.mxu1 %v4082_v33 }
 0x22c   :  { %3709 = vmatprep.subr.bf16.mxu1 %v4758_v60 }
 0x2ce   :  { %v3593_v34 = vpop.f32.mrf.mxu1 }
 0x2d0   :  { %v3594_v36 = vpop.f32.mrf.mxu1 }
 0x2d1   :  { %v3595_v37 = vadd.f32 %v3594_v36, %v3593_v34  ;;  %v4110_v34 = vld [vmem:[#allocation14 + $0x20] sm:$0xff]   ;;  %v4112_v36 = vld [vmem:[#allocation14 + $0x10] sm:$0xff]  }
 0x2d2   :  { %v3596_v38 = vpop.f32.mrf.mxu1 }
 0x2d3   :  { %v1156_v39 = vadd.f32 %v3595_v37, %v3352_v35  ;;  %v4111_v35 = vld [vmem:[#allocation14 + $0x18] sm:$0xff]   ;;  %v4113_v37 = vld [vmem:[#allocation14 + $0x8] sm:$0xff]   ;;  %v4114_v38 = vld [vmem:[#allocation14] sm:$0xff]  }
 0x2d4   :  { %v3597_v40 = vpop.f32.mrf.mxu1 }
 0x2d5   :  { %4327 = vtanh.f32 %v1156_v39  ;;  %v4115_v39 = vld [vmem:[#allocation16 + $0x38] sm:$0xff]   ;;  %v4116_v40 = vld [vmem:[#allocation16 + $0x30] sm:$0xff]  }
 0x2e2   :  { %v4328_v41 = vpop.eup %4327 }
 0x2e3   :  { %v1162_v43 = vpack.c.bf16 %v4328_v41, %v4328_v41  ;;  %v4117_v41 = vld [vmem:[#allocation16 + $0x28] sm:$0xff]  }
 0x2e5   :  { %3706 = vmatmul.mubr.bf16.vlgmr.msra.gmra.mxu1 %v1162_v43 }
 0x2e6   :  { %3710 = vmatpush3.bf16.msra.mxu1 %v4083_v42  ;;  %3725 = vmatprep.mubr.msk.bf16.mxu1 %vm4759_vm0, %v4758_v60  ;;  %v3396_v42 = vld [vmem:[%s5123_s15 + $0x6] ss:$0 sm:$0xff] }
 0x2e7   :  { %3711 = vmatprep.subr.bf16.mxu1 %v4758_v60 }
 0x2ea   :  { %3712 = vmatpush3.bf16.msra.mxu1 %v4084_v44 }
 0x2eb   :  { %3713 = vmatprep.subr.bf16.mxu1 %v4758_v60 }
 0x2ee   :  { %3714 = vmatpush3.bf16.msra.mxu1 %v4085_v45 }
 0x2ef   :  { %3715 = vmatprep.subr.bf16.mxu1 %v4758_v60 }
 0x2f2   :  { %3716 = vmatpush3.bf16.msra.mxu1 %v4086_v46 }
 0x2f3   :  { %3717 = vmatprep.subr.bf16.mxu1 %v4758_v60 }
 0x2f6   :  { %3718 = vmatpush3.bf16.msra.mxu1 %v4087_v47 }
 0x2f7   :  { %3719 = vmatprep.subr.bf16.mxu1 %v4758_v60 }
 0x2fa   :  { %3720 = vmatpush3.bf16.msra.mxu1 %v4088_v48 }
 0x2fb   :  { %3721 = vmatprep.subr.bf16.mxu1 %v4758_v60 }
 0x2fe   :  { %3722 = vmatpush3.bf16.msra.mxu1 %v4089_v49 }
 0x2ff   :  { %3723 = vmatprep.subr.bf16.mxu1 %v4758_v60 }
 0x302   :  { %3724 = vmatpush3.bf16.msra.mxu1 %v4090_v50  ;;  %v4118_v50 = vld [vmem:[#allocation16 + $0x20] sm:$0xff]  }
 0x303   :  { %3729 = vmatprep.subr.bf16.mxu1 %v4758_v60 }
 0x3a5   :  { %v1268_v52 = vpop.f32.mrf.mxu1 }
 0x3a6   :  { %v1269_v53 = vadd.f32 %v3369_v51, %v1268_v52  ;;  %v4119_v51 = vld [vmem:[#allocation16 + $0x18] sm:$0xff]   ;;  %v4120_v52 = vld [vmem:[#allocation16 + $0x10] sm:$0xff]  }
 0x3a7   :  { %v3707_v54 = vpop.f32.mrf.mxu1 }
 0x3a8   :  { %4329 = vtanh.f32 %v1269_v53  ;;  %v4121_v53 = vld [vmem:[#allocation16 + $0x8] sm:$0xff]   ;;  %v4122_v54 = vld [vmem:[#allocation16] sm:$0xff]  }
 0x3a9   :  { %v1271_v55 = vpop.f32.mrf.mxu1 }
 0x3aa   :  { %v4123_v55 = vld [vmem:[#allocation17 + $0x38] sm:$0xff]  }
 0x3ab   :  { %v3708_v56 = vpop.f32.mrf.mxu1 }
 0x3ac   :  { %v4124_v56 = vld [vmem:[#allocation17 + $0x30] sm:$0xff]  }
 0x3b5   :  { %v4330_v57 = vpop.eup %4329 }
 0x3b6   :  { %v1275_v59 = vpack.c.bf16 %v4330_v57, %v4330_v57  ;;  %v4125_v57 = vld [vmem:[#allocation17 + $0x28] sm:$0xff]  }
 0x3b8   :  { %3726 = vmatmul.mubr.bf16.vlgmr.msra.gmra.mxu1 %v1275_v59 }
 0x3b9   :  { %3730 = vmatpush3.bf16.msra.mxu1 %v4091_v58  ;;  %3745 = vmatprep.mubr.msk.bf16.mxu1 %vm4759_vm0, %v4758_v60  ;;  %v3405_v58 = vld [vmem:[%s5123_s15 + $0x7] ss:$0 sm:$0xff] }
 0x3ba   :  { %3731 = vmatprep.subr.bf16.mxu1 %v4758_v60 }
 0x3bd   :  { %3732 = vmatpush3.bf16.msra.mxu1 %v4092_v61 }
 0x3be   :  { %3733 = vmatprep.subr.bf16.mxu1 %v4758_v60 }
 0x3c1   :  { %3734 = vmatpush3.bf16.msra.mxu1 %v4093_v62 }
 0x3c2   :  { %3735 = vmatprep.subr.bf16.mxu1 %v4758_v60 }
 0x3c5   :  { %3736 = vmatpush3.bf16.msra.mxu1 %v4094_v63 }
 0x3c6   :  { %3737 = vmatprep.subr.bf16.mxu1 %v4758_v60 }
 0x3c9   :  { %3738 = vmatpush3.bf16.msra.mxu1 %v4095_v0 }
 0x3ca   :  { %3739 = vmatprep.subr.bf16.mxu1 %v4758_v60 }
 0x3cd   :  { %3740 = vmatpush3.bf16.msra.mxu1 %v4096_v1 }
 0x3ce   :  { %3741 = vmatprep.subr.bf16.mxu1 %v4758_v60 }
 0x3d1   :  { %3742 = vmatpush3.bf16.msra.mxu1 %v4097_v2 }
 0x3d2   :  { %3743 = vmatprep.subr.bf16.mxu1 %v4758_v60 }
 0x3d5   :  { %3744 = vmatpush3.bf16.msra.mxu1 %v4098_v3  ;;  %v4126_v3 = vld [vmem:[#allocation17 + $0x20] sm:$0xff]  }
 0x3d6   :  { %3769 = vmatprep.subr.bf16.mxu1 %v4758_v60 }
 0x478   :  { %v1381_v11 = vpop.f32.mrf.mxu1 }
 0x479   :  { %v1382_v12 = vadd.f32 %v3378_v10, %v1381_v11  ;;  %v4130_v10 = vld [vmem:[#allocation17] sm:$0xff]   ;;  %v4131_v11 = vld [vmem:[#allocation19 + $0x38] sm:$0xff]  }
 0x47a   :  { %v3727_v13 = vpop.f32.mrf.mxu1 }
 0x47b   :  { %4331 = vtanh.f32 %v1382_v12  ;;  %v4132_v12 = vld [vmem:[#allocation19 + $0x30] sm:$0xff]   ;;  %v4133_v13 = vld [vmem:[#allocation19 + $0x28] sm:$0xff]  }
 0x47c   :  { %v1384_v14 = vpop.f32.mrf.mxu1 }
 0x47d   :  { %v3414_v14 = vld [vmem:[%s5123_s15 + $0x8] ss:$0 sm:$0xff] }
 0x47e   :  { %v3728_v15 = vpop.f32.mrf.mxu1 }
 0x488   :  { %v4332_v16 = vpop.eup %4331 }
 0x489   :  { %v1388_v17 = vpack.c.bf16 %v4332_v16, %v4332_v16 }
 0x48b   :  { %3746 = vmatmul.mubr.bf16.vlgmr.msra.gmra.mxu1 %v1388_v17 }
 0x48c   :  { %3785 = vmatprep.mubr.msk.bf16.mxu1 %vm4759_vm0, %v4758_v60  ;;  %3770 = vmatpush3.bf16.msra.mxu1 %v4107_v23  ;;  %v4135_v23 = vld [vmem:[#allocation19 + $0x18] sm:$0xff]  }
 0x48d   :  { %3771 = vmatprep.subr.bf16.mxu1 %v4758_v60 }
 0x490   :  { %3772 = vmatpush3.bf16.msra.mxu1 %v4108_v24  ;;  %v4136_v24 = vld [vmem:[#allocation19 + $0x10] sm:$0xff]  }
 0x491   :  { %3773 = vmatprep.subr.bf16.mxu1 %v4758_v60 }
 0x494   :  { %3774 = vmatpush3.bf16.msra.mxu1 %v4109_v25  ;;  %v4137_v25 = vld [vmem:[#allocation19 + $0x8] sm:$0xff]  }
 0x495   :  { %3775 = vmatprep.subr.bf16.mxu1 %v4758_v60 }
 0x498   :  { %3776 = vmatpush3.bf16.msra.mxu1 %v4110_v34 }
 0x499   :  { %3777 = vmatprep.subr.bf16.mxu1 %v4758_v60 }
 0x49c   :  { %3778 = vmatpush3.bf16.msra.mxu1 %v4111_v35 }
 0x49d   :  { %3779 = vmatprep.subr.bf16.mxu1 %v4758_v60 }
 0x4a0   :  { %3780 = vmatpush3.bf16.msra.mxu1 %v4112_v36 }
 0x4a1   :  { %3781 = vmatprep.subr.bf16.mxu1 %v4758_v60 }
 0x4a4   :  { %3782 = vmatpush3.bf16.msra.mxu1 %v4113_v37 }
 0x4a5   :  { %3783 = vmatprep.subr.bf16.mxu1 %v4758_v60 }
 0x4a8   :  { %3784 = vmatpush3.bf16.msra.mxu1 %v4114_v38  ;;  %v4142_v38 = vld [vmem:[#allocation20 + $0x20] sm:$0xff]  }
 0x4a9   :  { %3809 = vmatprep.subr.bf16.mxu1 %v4758_v60 }
 0x54b   :  { %v1494_v27 = vpop.f32.mrf.mxu1 }
 0x54c   :  { %v1495_v28 = vadd.f32 %v3387_v26, %v1494_v27  ;;  %v4138_v26 = vld [vmem:[#allocation19] sm:$0xff]   ;;  %v4139_v27 = vld [vmem:[#allocation20 + $0x38] sm:$0xff]  }
 0x54d   :  { %v3747_v29 = vpop.f32.mrf.mxu1 }
 0x54e   :  { %4333 = vtanh.f32 %v1495_v28  ;;  %v4140_v28 = vld [vmem:[#allocation20 + $0x30] sm:$0xff]   ;;  %v4141_v29 = vld [vmem:[#allocation20 + $0x28] sm:$0xff]  }
 0x54f   :  { %v1497_v30 = vpop.f32.mrf.mxu1 }
 0x550   :  { %v3423_v30 = vld [vmem:[%s5123_s15 + $0x9] ss:$0 sm:$0xff] }
 0x551   :  { %v3748_v31 = vpop.f32.mrf.mxu1 }
 0x55b   :  { %v4334_v32 = vpop.eup %4333 }
 0x55c   :  { %v1501_v33 = vpack.c.bf16 %v4334_v32, %v4334_v32 }
 0x55e   :  { %3766 = vmatmul.mubr.bf16.vlgmr.msra.gmra.mxu0 %v1501_v33 }
 0x55f   :  { %3805 = vmatprep.mubr.msk.bf16.mxu0 %vm4759_vm0, %v4758_v60  ;;  %3790 = vmatpush3.bf16.msra.mxu0 %v4115_v39  ;;  %v4143_v39 = vld [vmem:[#allocation20 + $0x18] sm:$0xff]  }
 0x560   :  { %3791 = vmatprep.subr.bf16.mxu0 %v4758_v60 }
 0x563   :  { %3792 = vmatpush3.bf16.msra.mxu0 %v4116_v40  ;;  %v4144_v40 = vld [vmem:[#allocation20 + $0x10] sm:$0xff]  }
 0x564   :  { %3793 = vmatprep.subr.bf16.mxu0 %v4758_v60 }
 0x567   :  { %3794 = vmatpush3.bf16.msra.mxu0 %v4117_v41  ;;  %v4145_v41 = vld [vmem:[#allocation20 + $0x8] sm:$0xff]  }
 0x568   :  { %3795 = vmatprep.subr.bf16.mxu0 %v4758_v60 }
 0x56b   :  { %3796 = vmatpush3.bf16.msra.mxu0 %v4118_v50 }
 0x56c   :  { %3797 = vmatprep.subr.bf16.mxu0 %v4758_v60 }
 0x56f   :  { %3798 = vmatpush3.bf16.msra.mxu0 %v4119_v51 }
 0x570   :  { %3799 = vmatprep.subr.bf16.mxu0 %v4758_v60 }
 0x573   :  { %3800 = vmatpush3.bf16.msra.mxu0 %v4120_v52 }
 0x574   :  { %3801 = vmatprep.subr.bf16.mxu0 %v4758_v60 }
 0x577   :  { %3802 = vmatpush3.bf16.msra.mxu0 %v4121_v53 }
 0x578   :  { %3803 = vmatprep.subr.bf16.mxu0 %v4758_v60 }
 0x57b   :  { %3804 = vmatpush3.bf16.msra.mxu0 %v4122_v54  ;;  %v4150_v54 = vld [vmem:[#allocation22 + $0x20] sm:$0xff]  }
 0x57c   :  { %3829 = vmatprep.subr.bf16.mxu0 %v4758_v60 }
 0x61e   :  { %v1607_v43 = vpop.f32.mrf.mxu0 }
 0x61f   :  { %v1608_v44 = vadd.f32 %v3396_v42, %v1607_v43  ;;  %v4146_v42 = vld [vmem:[#allocation20] sm:$0xff]   ;;  %v4147_v43 = vld [vmem:[#allocation22 + $0x38] sm:$0xff]  }
 0x620   :  { %v3767_v45 = vpop.f32.mrf.mxu0 }
 0x621   :  { %4335 = vtanh.f32 %v1608_v44  ;;  %v4148_v44 = vld [vmem:[#allocation22 + $0x30] sm:$0xff]   ;;  %v4149_v45 = vld [vmem:[#allocation22 + $0x28] sm:$0xff]  }
 0x622   :  { %v1610_v46 = vpop.f32.mrf.mxu0 }
 0x623   :  { %v3432_v46 = vld [vmem:[%s5123_s15 + $0xa] ss:$0 sm:$0xff] }
 0x624   :  { %v3768_v47 = vpop.f32.mrf.mxu0 }
 0x62e   :  { %v4336_v48 = vpop.eup %4335 }
 0x62f   :  { %v1614_v49 = vpack.c.bf16 %v4336_v48, %v4336_v48 }
 0x631   :  { %3786 = vmatmul.mubr.bf16.vlgmr.msra.gmra.mxu1 %v1614_v49 }
 0x632   :  { %3825 = vmatprep.mubr.msk.bf16.mxu1 %vm4759_vm0, %v4758_v60  ;;  %3810 = vmatpush3.bf16.msra.mxu1 %v4123_v55  ;;  %v4151_v55 = vld [vmem:[#allocation22 + $0x18] sm:$0xff]  }
 0x633   :  { %3811 = vmatprep.subr.bf16.mxu1 %v4758_v60 }
 0x636   :  { %3812 = vmatpush3.bf16.msra.mxu1 %v4124_v56  ;;  %v4152_v56 = vld [vmem:[#allocation22 + $0x10] sm:$0xff]  }
 0x637   :  { %3813 = vmatprep.subr.bf16.mxu1 %v4758_v60 }
 0x63a   :  { %3814 = vmatpush3.bf16.msra.mxu1 %v4125_v57  ;;  %v4153_v57 = vld [vmem:[#allocation22 + $0x8] sm:$0xff]  }
 0x63b   :  { %3815 = vmatprep.subr.bf16.mxu1 %v4758_v60 }
 0x63e   :  { %3816 = vmatpush3.bf16.msra.mxu1 %v4126_v3  ;;  %v4164_v3 = vld [vmem:[#allocation23 + $0x40] ss:$8 sps:$4 sm:$0xff]  }
 0x63f   :  { %3817 = vmatprep.subr.bf16.mxu1 %v4758_v60 }
 0x642   :  { %3818 = vmatpush3.bf16.msra.mxu1 %v4127_v4 }
 0x643   :  { %3819 = vmatprep.subr.bf16.mxu1 %v4758_v60 }
 0x646   :  { %3820 = vmatpush3.bf16.msra.mxu1 %v4128_v5 }
 0x647   :  { %3821 = vmatprep.subr.bf16.mxu1 %v4758_v60 }
 0x64a   :  { %3822 = vmatpush3.bf16.msra.mxu1 %v4129_v8 }
 0x64b   :  { %3823 = vmatprep.subr.bf16.mxu1 %v4758_v60 }
 0x64e   :  { %3824 = vmatpush3.bf16.msra.mxu1 %v4130_v10 }
 0x64f   :  { %3849 = vmatprep.subr.bf16.mxu1 %v4758_v60 }
 0x6f1   :  { %v1720_v59 = vpop.f32.mrf.mxu1 }
 0x6f2   :  { %v1721_v61 = vadd.f32 %v3405_v58, %v1720_v59  ;;  %v4154_v58 = vld [vmem:[#allocation22] sm:$0xff]   ;;  %v4155_v59 = vld [vmem:[#allocation23 + $0x70] ss:$8 sps:$4 sm:$0xff]  }
 0x6f3   :  { %v3787_v62 = vpop.f32.mrf.mxu1 }
 0x6f4   :  { %4337 = vtanh.f32 %v1721_v61  ;;  %v4157_v61 = vld [vmem:[#allocation23 + $0x74] ss:$8 sps:$4 sm:$0xff]   ;;  %v4160_v62 = vld [vmem:[#allocation23 + $0x64] ss:$8 sps:$4 sm:$0xff]  }
 0x6f5   :  { %v1723_v63 = vpop.f32.mrf.mxu1 }
 0x6f6   :  { %v4158_v63 = vld [vmem:[#allocation23 + $0x60] ss:$8 sps:$4 sm:$0xff]  }
 0x6f7   :  { %v3788_v0 = vpop.f32.mrf.mxu1 }
 0x6f8   :  { %v4163_v0 = vld [vmem:[#allocation23 + $0x54] ss:$8 sps:$4 sm:$0xff]  }
 0x701   :  { %v4338_v1 = vpop.eup %4337 }
 0x702   :  { %1727 = vst [vmem:[#allocation26] sm:$0xff] %v4338_v1  ;;  %v1728_v2 = vpack.c.bf16 %v4338_v1, %v4338_v1  ;;  %v4161_v1 = vld [vmem:[#allocation23 + $0x50] ss:$8 sps:$4 sm:$0xff]  }
 0x704   :  { %3806 = vmatmul.mubr.bf16.vlgmr.msra.gmra.mxu0 %v1728_v2  ;;  %v4166_v2 = vld [vmem:[#allocation23 + $0x44] ss:$8 sps:$4 sm:$0xff]  }
 0x705   :  { %3845 = vmatprep.mubr.msk.bf16.mxu0 %vm4759_vm0, %v4758_v60  ;;  %3830 = vmatpush3.bf16.msra.mxu0 %v4131_v11 }
 0x706   :  { %3831 = vmatprep.subr.bf16.mxu0 %v4758_v60 }
 0x709   :  { %3832 = vmatpush3.bf16.msra.mxu0 %v4132_v12 }
 0x70a   :  { %3833 = vmatprep.subr.bf16.mxu0 %v4758_v60 }
 0x70d   :  { %3834 = vmatpush3.bf16.msra.mxu0 %v4133_v13 }
 0x70e   :  { %3835 = vmatprep.subr.bf16.mxu0 %v4758_v60 }
 0x711   :  { %3836 = vmatpush3.bf16.msra.mxu0 %v4134_v22  ;;  %v4760_v22 = vmov 0  }
 0x712   :  { %3837 = vmatprep.subr.bf16.mxu0 %v4758_v60 }
 0x715   :  { %3838 = vmatpush3.bf16.msra.mxu0 %v4135_v23  ;;  %v4179_v23 = vld [vmem:[#allocation25 + $0x150] ss:$24 sps:$4 sm:$0xff]  }
 0x716   :  { %3839 = vmatprep.subr.bf16.mxu0 %v4758_v60 }
 0x719   :  { %3840 = vmatpush3.bf16.msra.mxu0 %v4136_v24  ;;  %v4181_v24 = vld [vmem:[#allocation25 + $0x154] ss:$24 sps:$4 sm:$0xff]  }
 0x71a   :  { %3841 = vmatprep.subr.bf16.mxu0 %v4758_v60 }
 0x71d   :  { %3842 = vmatpush3.bf16.msra.mxu0 %v4137_v25  ;;  %v4184_v25 = vld [vmem:[#allocation25 + $0x15c] ss:$24 sps:$4 sm:$0xff]  }
 0x71e   :  { %3843 = vmatprep.subr.bf16.mxu0 %v4758_v60 }
 0x721   :  { %3844 = vmatpush3.bf16.msra.mxu0 %v4138_v26  ;;  %v4187_v26 = vld [vmem:[#allocation25 + $0x124] ss:$24 sps:$4 sm:$0xff]  }
 0x722   :  { %3869 = vmatprep.subr.bf16.mxu0 %v4758_v60 }
 0x7c4   :  { %v1834_v15 = vpop.f32.mrf.mxu0 }
 0x7c5   :  { %v1835_v16 = vadd.f32 %v3414_v14, %v1834_v15  ;;  %v4169_v14 = vld [vmem:[#allocation23 + $0x34] ss:$8 sps:$4 sm:$0xff]   ;;  %v4167_v15 = vld [vmem:[#allocation23 + $0x30] ss:$8 sps:$4 sm:$0xff]  }
 0x7c6   :  { %v3807_v17 = vpop.f32.mrf.mxu0 }
 0x7c7   :  { %4339 = vtanh.f32 %v1835_v16  ;;  %v4172_v16 = vld [vmem:[#allocation23 + $0x24] ss:$8 sps:$4 sm:$0xff]   ;;  %v4170_v17 = vld [vmem:[#allocation23 + $0x20] ss:$8 sps:$4 sm:$0xff]  }
 0x7c8   :  { %v1837_v18 = vpop.f32.mrf.mxu0 }
 0x7c9   :  { %v4175_v18 = vld [vmem:[#allocation23 + $0x14] ss:$8 sps:$4 sm:$0xff]  }
 0x7ca   :  { %v3808_v19 = vpop.f32.mrf.mxu0 }
 0x7cb   :  { %v4173_v19 = vld [vmem:[#allocation23 + $0x10] ss:$8 sps:$4 sm:$0xff]  }
 0x7d4   :  { %v4340_v20 = vpop.eup %4339 }
 0x7d5   :  { %v1841_v21 = vpack.c.bf16 %v4340_v20, %v4340_v20  ;;  %v4178_v20 = vld [vmem:[#allocation23 + $0x4] ss:$8 sps:$4 sm:$0xff]  }
 0x7d7   :  { %3826 = vmatmul.mubr.bf16.vlgmr.msra.gmra.mxu1 %v1841_v21  ;;  %v4176_v21 = vld [vmem:[#allocation23] ss:$8 sps:$4 sm:$0xff]  }
 0x7d8   :  { %3865 = vmatprep.mubr.msk.bf16.mxu1 %vm4759_vm0, %v4758_v60  ;;  %3850 = vmatpush3.bf16.msra.mxu1 %v4139_v27  ;;  %v4185_v27 = vld [vmem:[#allocation25 + $0x120] ss:$24 sps:$4 sm:$0xff]  }
 0x7d9   :  { %3851 = vmatprep.subr.bf16.mxu1 %v4758_v60 }
 0x7dc   :  { %3852 = vmatpush3.bf16.msra.mxu1 %v4140_v28  ;;  %v4193_v28 = vld [vmem:[#allocation25 + $0xf4] ss:$24 sps:$4 sm:$0xff]  }
 0x7dd   :  { %3853 = vmatprep.subr.bf16.mxu1 %v4758_v60 }
 0x7e0   :  { %3854 = vmatpush3.bf16.msra.mxu1 %v4141_v29  ;;  %v4191_v29 = vld [vmem:[#allocation25 + $0xf0] ss:$24 sps:$4 sm:$0xff]  }
 0x7e1   :  { %3855 = vmatprep.subr.bf16.mxu1 %v4758_v60 }
 0x7e4   :  { %3856 = vmatpush3.bf16.msra.mxu1 %v4142_v38  ;;  %v4223_v38 = vld [vmem:[#allocation25 + $0x4] ss:$24 sps:$4 sm:$0xff]  }
 0x7e5   :  { %3857 = vmatprep.subr.bf16.mxu1 %v4758_v60 }
 0x7e8   :  { %3858 = vmatpush3.bf16.msra.mxu1 %v4143_v39  ;;  %v4221_v39 = vld [vmem:[#allocation25] ss:$24 sps:$4 sm:$0xff]  }
 0x7e9   :  { %3859 = vmatprep.subr.bf16.mxu1 %v4758_v60 }
 0x7ec   :  { %3860 = vmatpush3.bf16.msra.mxu1 %v4144_v40  ;;  %v4229_v40 = vld [vmem:[#allocation25 + $0x2d4] ss:$24 sps:$4 sm:$0xff]  }
 0x7ed   :  { %3861 = vmatprep.subr.bf16.mxu1 %v4758_v60 }
 0x7f0   :  { %3862 = vmatpush3.bf16.msra.mxu1 %v4145_v41  ;;  %v4227_v41 = vld [vmem:[#allocation25 + $0x2d0] ss:$24 sps:$4 sm:$0xff]  }
 0x7f1   :  { %3863 = vmatprep.subr.bf16.mxu1 %v4758_v60 }
 0x7f4   :  { %3864 = vmatpush3.bf16.msra.mxu1 %v4146_v42  ;;  %v4235_v42 = vld [vmem:[#allocation25 + $0x2a4] ss:$24 sps:$4 sm:$0xff]  }
 0x7f5   :  { %2402 = vmatprep.subr.bf16.mxu1 %v4157_v61  ;;  %v4200_v61 = vld [vmem:[#allocation25 + $0xc8] ss:$24 sps:$4 sm:$0xff]  }
 0x897   :  { %v1947_v31 = vpop.f32.mrf.mxu1 }
 0x898   :  { %v1948_v32 = vadd.f32 %v3423_v30, %v1947_v31  ;;  %v4199_v30 = vld [vmem:[#allocation25 + $0xc4] ss:$24 sps:$4 sm:$0xff]   ;;  %v4197_v31 = vld [vmem:[#allocation25 + $0xc0] ss:$24 sps:$4 sm:$0xff]  }
 0x899   :  { %v3827_v33 = vpop.f32.mrf.mxu1 }
 0x89a   :  { %4341 = vtanh.f32 %v1948_v32  ;;  %v4205_v32 = vld [vmem:[#allocation25 + $0x94] ss:$24 sps:$4 sm:$0xff]   ;;  %v4203_v33 = vld [vmem:[#allocation25 + $0x90] ss:$24 sps:$4 sm:$0xff]  }
 0x89b   :  { %v1950_v34 = vpop.f32.mrf.mxu1 }
 0x89c   :  { %v4211_v34 = vld [vmem:[#allocation25 + $0x64] ss:$24 sps:$4 sm:$0xff]  }
 0x89d   :  { %v3828_v35 = vpop.f32.mrf.mxu1 }
 0x89e   :  { %v4209_v35 = vld [vmem:[#allocation25 + $0x60] ss:$24 sps:$4 sm:$0xff]  }
 0x8a7   :  { %v4342_v36 = vpop.eup %4341 }
 0x8a8   :  { %v1954_v37 = vpack.c.bf16 %v4342_v36, %v4342_v36  ;;  %v4217_v36 = vld [vmem:[#allocation25 + $0x34] ss:$24 sps:$4 sm:$0xff]  }
 0x8aa   :  { %3846 = vmatmul.mubr.bf16.vlgmr.msra.gmra.mxu0 %v1954_v37  ;;  %v4215_v37 = vld [vmem:[#allocation25 + $0x30] ss:$24 sps:$4 sm:$0xff]  }
 0x8ab   :  { %3885 = vmatprep.mubr.msk.bf16.mxu0 %vm4759_vm0, %v4758_v60  ;;  %3870 = vmatpush3.bf16.msra.mxu0 %v4147_v43  ;;  %v4233_v43 = vld [vmem:[#allocation25 + $0x2a0] ss:$24 sps:$4 sm:$0xff]  }
 0x8ac   :  { %3871 = vmatprep.subr.bf16.mxu0 %v4758_v60 }
 0x8af   :  { %3872 = vmatpush3.bf16.msra.mxu0 %v4148_v44  ;;  %v4241_v44 = vld [vmem:[#allocation25 + $0x274] ss:$24 sps:$4 sm:$0xff]  }
 0x8b0   :  { %3873 = vmatprep.subr.bf16.mxu0 %v4758_v60 }
 0x8b3   :  { %3874 = vmatpush3.bf16.msra.mxu0 %v4149_v45  ;;  %v4239_v45 = vld [vmem:[#allocation25 + $0x270] ss:$24 sps:$4 sm:$0xff]  }
 0x8b4   :  { %3875 = vmatprep.subr.bf16.mxu0 %v4758_v60 }
 0x8b7   :  { %3876 = vmatpush3.bf16.msra.mxu0 %v4150_v54 }
 0x8b8   :  { %3877 = vmatprep.subr.bf16.mxu0 %v4758_v60 }
 0x8bb   :  { %3878 = vmatpush3.bf16.msra.mxu0 %v4151_v55  ;;  %v4190_v55 = vld [vmem:[#allocation25 + $0x12c] ss:$24 sps:$4 sm:$0xff]  }
 0x8bc   :  { %3879 = vmatprep.subr.bf16.mxu0 %v4758_v60 }
 0x8bf   :  { %3880 = vmatpush3.bf16.msra.mxu0 %v4152_v56  ;;  %v4188_v56 = vld [vmem:[#allocation25 + $0x128] ss:$24 sps:$4 sm:$0xff]  }
 0x8c0   :  { %3881 = vmatprep.subr.bf16.mxu0 %v4758_v60 }
 0x8c3   :  { %3882 = vmatpush3.bf16.msra.mxu0 %v4153_v57  ;;  %v4196_v57 = vld [vmem:[#allocation25 + $0xfc] ss:$24 sps:$4 sm:$0xff]  }
 0x8c4   :  { %3883 = vmatprep.subr.bf16.mxu0 %v4758_v60  ;;  %v3441_v60 = vld [vmem:[%s5123_s15 + $0xb] ss:$0 sm:$0xff] }
 0x8c7   :  { %3884 = vmatpush3.bf16.msra.mxu0 %v4154_v58  ;;  %v4194_v58 = vld [vmem:[#allocation25 + $0xf8] ss:$24 sps:$4 sm:$0xff]  }
 0x8c8   :  { %3055 = vmatprep.subr.bf16.mxu0 %v4181_v24  ;;  %v4262_v24 = vld [vmem:[#allocation25 + $0x1ec] ss:$24 sps:$4 sm:$0xff]  }
 0x96a   :  { %v2060_v47 = vpop.f32.mrf.mxu0 }
 0x96b   :  { %v2061_v48 = vadd.f32 %v3432_v46, %v2060_v47  ;;  %v3450_v46 = vld [vmem:[%s5123_s15 + $0xc] ss:$0 sm:$0xff] }
 0x96c   :  { %v3847_v49 = vpop.f32.mrf.mxu0 }
 0x96d   :  { %4343 = vtanh.f32 %v2061_v48 }
 0x96e   :  { %v2063_v50 = vpop.f32.mrf.mxu0 }
 0x970   :  { %v3848_v51 = vpop.f32.mrf.mxu0 }
 0x97a   :  { %v4344_v52 = vpop.eup %4343 }
 0x97b   :  { %v2067_v53 = vpack.c.bf16 %v4344_v52, %v4344_v52 }
 0x97d   :  { %3866 = vmatmul.mubr.bf16.vlgmr.msra.gmra.mxu1 %v2067_v53  ;;  %v4182_v53 = vld [vmem:[#allocation25 + $0x158] ss:$24 sps:$4 sm:$0xff]  }
 0x97e   :  { %2403 = vmatpush1.bf16.msra.mxu1 %v4155_v59  ;;  %2434 = vmatprep.mubr.bf16.mxu1 %v4760_v22  ;;  %v4202_v59 = vld [vmem:[#allocation25 + $0xcc] ss:$24 sps:$4 sm:$0xff]  }
 0x97f   :  { %2404 = vmatprep.subr.bf16.mxu1 %v4160_v62  ;;  %v4208_v62 = vld [vmem:[#allocation25 + $0x9c] ss:$24 sps:$4 sm:$0xff]  }
 0x980   :  { %v4259_v22 = vld [vmem:[#allocation25 + $0x1e4] ss:$24 sps:$4 sm:$0xff]  }
 0x982   :  { %2405 = vmatpush1.bf16.msra.mxu1 %v4158_v63  ;;  %v4206_v63 = vld [vmem:[#allocation25 + $0x98] ss:$24 sps:$4 sm:$0xff]  }
 0x983   :  { %2406 = vmatprep.subr.bf16.mxu1 %v4163_v0  ;;  %v4214_v0 = vld [vmem:[#allocation25 + $0x6c] ss:$24 sps:$4 sm:$0xff]  }
 0x986   :  { %2407 = vmatpush1.bf16.msra.mxu1 %v4161_v1  ;;  %v4212_v1 = vld [vmem:[#allocation25 + $0x68] ss:$24 sps:$4 sm:$0xff]  }
 0x987   :  { %2408 = vmatprep.subr.bf16.mxu1 %v4166_v2  ;;  %v4220_v2 = vld [vmem:[#allocation25 + $0x3c] ss:$24 sps:$4 sm:$0xff]  }
 0x98a   :  { %2409 = vmatpush1.bf16.msra.mxu1 %v4164_v3  ;;  %v4218_v3 = vld [vmem:[#allocation25 + $0x38] ss:$24 sps:$4 sm:$0xff]  }
 0x98b   :  { %2410 = vmatprep.subr.bf16.mxu1 %v4169_v14  ;;  %v4247_v14 = vld [vmem:[#allocation25 + $0x244] ss:$24 sps:$4 sm:$0xff]  }
 0x98e   :  { %2411 = vmatpush1.bf16.msra.mxu1 %v4167_v15  ;;  %v4245_v15 = vld [vmem:[#allocation25 + $0x240] ss:$24 sps:$4 sm:$0xff]  }
 0x98f   :  { %2412 = vmatprep.subr.bf16.mxu1 %v4172_v16  ;;  %v4250_v16 = vld [vmem:[#allocation25 + $0x24c] ss:$24 sps:$4 sm:$0xff]  }
 0x992   :  { %2413 = vmatpush1.bf16.msra.mxu1 %v4170_v17  ;;  %v4248_v17 = vld [vmem:[#allocation25 + $0x248] ss:$24 sps:$4 sm:$0xff]  }
 0x993   :  { %2414 = vmatprep.subr.bf16.mxu1 %v4175_v18  ;;  %v4253_v18 = vld [vmem:[#allocation25 + $0x214] ss:$24 sps:$4 sm:$0xff]  }
 0x996   :  { %2415 = vmatpush1.bf16.msra.mxu1 %v4173_v19  ;;  %v4251_v19 = vld [vmem:[#allocation25 + $0x210] ss:$24 sps:$4 sm:$0xff]  }
 0x997   :  { %2416 = vmatprep.subr.bf16.mxu1 %v4178_v20  ;;  %v4256_v20 = vld [vmem:[#allocation25 + $0x21c] ss:$24 sps:$4 sm:$0xff]  }
 0x99a   :  { %2417 = vmatpush1.bf16.msra.mxu1 %v4176_v21  ;;  %v4254_v21 = vld [vmem:[#allocation25 + $0x218] ss:$24 sps:$4 sm:$0xff]  }
 0x99b   :  { %3096 = vmatprep.subr.bf16.mxu1 %v4184_v25  ;;  %v4260_v25 = vld [vmem:[#allocation25 + $0x1e8] ss:$24 sps:$4 sm:$0xff]  }
 0xa3d   :  { %v2173_v4 = vpop.f32.mrf.mxu1 }
 0xa3e   :  { %v2174_v5 = vadd.f32 %v3441_v60, %v2173_v4  ;;  %v4226_v60 = vld [vmem:[#allocation25 + $0xc] ss:$24 sps:$4 sm:$0xff]   ;;  %v4224_v4 = vld [vmem:[#allocation25 + $0x8] ss:$24 sps:$4 sm:$0xff]  }
 0xa3f   :  { %v3867_v8 = vpop.f32.mrf.mxu1 }
 0xa40   :  { %4345 = vtanh.f32 %v2174_v5  ;;  %v4232_v5 = vld [vmem:[#allocation25 + $0x2dc] ss:$24 sps:$4 sm:$0xff]   ;;  %v4230_v8 = vld [vmem:[#allocation25 + $0x2d8] ss:$24 sps:$4 sm:$0xff]  }
 0xa41   :  { %v2176_v10 = vpop.f32.mrf.mxu1 }
 0xa42   :  { %v4238_v10 = vld [vmem:[#allocation25 + $0x2ac] ss:$24 sps:$4 sm:$0xff]  }
 0xa43   :  { %v3868_v11 = vpop.f32.mrf.mxu1 }
 0xa44   :  { %v4236_v11 = vld [vmem:[#allocation25 + $0x2a8] ss:$24 sps:$4 sm:$0xff]  }
 0xa4d   :  { %v4346_v12 = vpop.eup %4345 }
 0xa4e   :  { %v2180_v13 = vpack.c.bf16 %v4346_v12, %v4346_v12  ;;  %v4244_v12 = vld [vmem:[#allocation25 + $0x27c] ss:$24 sps:$4 sm:$0xff]  }
 0xa50   :  { %3886 = vmatmul.mubr.bf16.vlgmr.msra.gmra.mxu0 %v2180_v13  ;;  %v4242_v13 = vld [vmem:[#allocation25 + $0x278] ss:$24 sps:$4 sm:$0xff]  }
 0xa51   :  { %3056 = vmatpush1.bf16.msra.mxu0 %v4179_v23  ;;  %v4257_v23 = vld [vmem:[#allocation25 + $0x1e0] ss:$24 sps:$4 sm:$0xff]  }
 0xa52   :  { %3057 = vmatprep.subr.bf16.mxu0 %v4187_v26  ;;  %v4265_v26 = vld [vmem:[#allocation25 + $0x1b4] ss:$24 sps:$4 sm:$0xff]  }
 0xa55   :  { %3058 = vmatpush1.bf16.msra.mxu0 %v4185_v27  ;;  %v4263_v27 = vld [vmem:[#allocation25 + $0x1b0] ss:$24 sps:$4 sm:$0xff]  }
 0xa56   :  { %3059 = vmatprep.subr.bf16.mxu0 %v4193_v28  ;;  %v4268_v28 = vld [vmem:[#allocation25 + $0x1bc] ss:$24 sps:$4 sm:$0xff]  }
 0xa59   :  { %3060 = vmatpush1.bf16.msra.mxu0 %v4191_v29  ;;  %v4266_v29 = vld [vmem:[#allocation25 + $0x1b8] ss:$24 sps:$4 sm:$0xff]  }
 0xa5a   :  { %3061 = vmatprep.subr.bf16.mxu0 %v4199_v30  ;;  %v4271_v30 = vld [vmem:[#allocation25 + $0x184] ss:$24 sps:$4 sm:$0xff]  }
 0xa5d   :  { %3062 = vmatpush1.bf16.msra.mxu0 %v4197_v31  ;;  %v4269_v31 = vld [vmem:[#allocation25 + $0x180] ss:$24 sps:$4 sm:$0xff]  }
 0xa5e   :  { %3063 = vmatprep.subr.bf16.mxu0 %v4205_v32  ;;  %v4274_v32 = vld [vmem:[#allocation25 + $0x18c] ss:$24 sps:$4 sm:$0xff]  }
 0xa61   :  { %3064 = vmatpush1.bf16.msra.mxu0 %v4203_v33  ;;  %v4272_v33 = vld [vmem:[#allocation25 + $0x188] ss:$24 sps:$4 sm:$0xff]  }
 0xa62   :  { %3065 = vmatprep.subr.bf16.mxu0 %v4211_v34  ;;  %v4277_v34 = vld [vmem:[#allocation25 + $0x164] ss:$24 sps:$4 sm:$0xff]  }
 0xa65   :  { %3066 = vmatpush1.bf16.msra.mxu0 %v4209_v35  ;;  %v2310_v35 = vld [vmem:[%s5123_s15 + $0xd] sm:$0x3] }
 0xa66   :  { %3067 = vmatprep.subr.bf16.mxu0 %v4217_v36  ;;  %v2315_v36 = vrot.slane %v2310_v35, %v4942_v7 }
 0xa69   :  { %3068 = vmatpush1.bf16.msra.mxu0 %v4215_v37  ;;  %v2319_v37 = vrot.slane %v2310_v35, %v4948_v9 }
 0xa6a   :  { %3069 = vmatprep.subr.bf16.mxu0 %v4223_v38 }
 0xa6d   :  { %3070 = vmatpush1.bf16.msra.mxu0 %v4221_v39 }
 0xa6e   :  { %3071 = vmatprep.subr.bf16.mxu0 %v4229_v40 }
 0xa71   :  { %3072 = vmatpush2.bf16.msra.mxu0 %v4227_v41 }
 0xa72   :  { %3073 = vmatprep.subr.bf16.mxu0 %v4235_v42 }
 0xa75   :  { %3074 = vmatpush2.bf16.msra.mxu0 %v4233_v43 }
 0xa76   :  { %3075 = vmatprep.subr.bf16.mxu0 %v4241_v44 }
 0xa79   :  { %3076 = vmatpush2.bf16.msra.mxu0 %v4239_v45 }
 0xa7a   :  { %3077 = vmatprep.subr.bf16.mxu0 %v4247_v14  ;;  %v4319_v14 = vld [vmem:[#allocation25 + $0x1c4] ss:$24 sps:$4 sm:$0xff]  }
 0xa7d   :  { %3078 = vmatpush2.bf16.msra.mxu0 %v4245_v15  ;;  %v4317_v15 = vld [vmem:[#allocation25 + $0x1c0] ss:$24 sps:$4 sm:$0xff]  }
 0xa7e   :  { %3079 = vmatprep.subr.bf16.mxu0 %v4253_v18 }
 0xa81   :  { %3080 = vmatpush2.bf16.msra.mxu0 %v4251_v19 }
 0xa82   :  { %3081 = vmatprep.subr.bf16.mxu0 %v4259_v22 }
 0xa85   :  { %3082 = vmatpush2.bf16.msra.mxu0 %v4257_v23 }
 0xa86   :  { %3083 = vmatprep.subr.bf16.mxu0 %v4265_v26 }
 0xa89   :  { %3084 = vmatpush2.bf16.msra.mxu0 %v4263_v27 }
 0xa8a   :  { %3085 = vmatprep.subr.bf16.mxu0 %v4271_v30 }
 0xa8d   :  { %3086 = vmatpush2.bf16.msra.mxu0 %v4269_v31 }
 0xa8e   :  { %3137 = vmatprep.subr.bf16.mxu0 %v4277_v34 }
 0xb10   :  { %v2286_v47 = vpop.f32.mrf.mxu0 }
 0xb11   :  { %v2287_v48 = vadd.f32 %v3450_v46, %v2286_v47  ;;  %v4275_v47 = vld [vmem:[#allocation25 + $0x160] ss:$24 sps:$4 sm:$0xff]  }
 0xb12   :  { %v3887_v49 = vpop.f32.mrf.mxu0 }
 0xb13   :  { %4347 = vtanh.f32 %v2287_v48  ;;  %v4280_v49 = vld [vmem:[#allocation25 + $0x134] ss:$24 sps:$4 sm:$0xff]  }
 0xb14   :  { %v2289_v50 = vpop.f32.mrf.mxu0 }
 0xb15   :  { %v4278_v50 = vld [vmem:[#allocation25 + $0x130] ss:$24 sps:$4 sm:$0xff]  }
 0xb16   :  { %v3888_v51 = vpop.f32.mrf.mxu0 }
 0xb17   :  { %v4283_v51 = vld [vmem:[#allocation25 + $0x104] ss:$24 sps:$4 sm:$0xff]  }
 0xb20   :  { %v4348_v52 = vpop.eup %4347 }
 0xb21   :  { %v2293_v54 = vpack.c.bf16 %v4348_v52, %v4348_v52  ;;  %v4281_v52 = vld [vmem:[#allocation25 + $0x100] ss:$24 sps:$4 sm:$0xff]  }
 0xb23   :  { %2435 = vmatmul.mubr.bf16.vlgmr.msra.gmra.mxu1 %v2293_v54  ;;  %v4284_v54 = vld [vmem:[#allocation25 + $0xd0] ss:$24 sps:$4 sm:$0xff]  }
 0xb24   :  { %3097 = vmatpush1.bf16.msra.mxu1 %v4182_v53  ;;  %v4286_v53 = vld [vmem:[#allocation25 + $0xd4] ss:$24 sps:$4 sm:$0xff]  }
 0xb25   :  { %3098 = vmatprep.subr.bf16.mxu1 %v4190_v55  ;;  %v4289_v55 = vld [vmem:[#allocation25 + $0xa4] ss:$24 sps:$4 sm:$0xff]  }
 0xb28   :  { %3099 = vmatpush1.bf16.msra.mxu1 %v4188_v56  ;;  %v4287_v56 = vld [vmem:[#allocation25 + $0xa0] ss:$24 sps:$4 sm:$0xff]  }
 0xb29   :  { %3100 = vmatprep.subr.bf16.mxu1 %v4196_v57  ;;  %v4292_v57 = vld [vmem:[#allocation25 + $0x74] ss:$24 sps:$4 sm:$0xff]  }
 0xb2c   :  { %3101 = vmatpush1.bf16.msra.mxu1 %v4194_v58  ;;  %v4290_v58 = vld [vmem:[#allocation25 + $0x70] ss:$24 sps:$4 sm:$0xff]  }
 0xb2d   :  { %3102 = vmatprep.subr.bf16.mxu1 %v4202_v59  ;;  %v4295_v59 = vld [vmem:[#allocation25 + $0x44] ss:$24 sps:$4 sm:$0xff]  }
 0xb30   :  { %3103 = vmatpush1.bf16.msra.mxu1 %v4200_v61  ;;  %v4293_v61 = vld [vmem:[#allocation25 + $0x40] ss:$24 sps:$4 sm:$0xff]  }
 0xb31   :  { %3104 = vmatprep.subr.bf16.mxu1 %v4208_v62  ;;  %v4298_v62 = vld [vmem:[#allocation25 + $0x14] ss:$24 sps:$4 sm:$0xff]  }
 0xb34   :  { %3105 = vmatpush1.bf16.msra.mxu1 %v4206_v63  ;;  %v4296_v63 = vld [vmem:[#allocation25 + $0x10] ss:$24 sps:$4 sm:$0xff]  }
 0xb35   :  { %3106 = vmatprep.subr.bf16.mxu1 %v4214_v0  ;;  %v4301_v0 = vld [vmem:[#allocation25 + $0x2e4] ss:$24 sps:$4 sm:$0xff]  }
 0xb38   :  { %3107 = vmatpush1.bf16.msra.mxu1 %v4212_v1  ;;  %v4299_v1 = vld [vmem:[#allocation25 + $0x2e0] ss:$24 sps:$4 sm:$0xff]  }
 0xb39   :  { %3108 = vmatprep.subr.bf16.mxu1 %v4220_v2  ;;  %v4304_v2 = vld [vmem:[#allocation25 + $0x2b4] ss:$24 sps:$4 sm:$0xff]  }
 0xb3c   :  { %3109 = vmatpush1.bf16.msra.mxu1 %v4218_v3  ;;  %v4302_v3 = vld [vmem:[#allocation25 + $0x2b0] ss:$24 sps:$4 sm:$0xff]  }
 0xb3d   :  { %3110 = vmatprep.subr.bf16.mxu1 %v4226_v60  ;;  %v4307_v60 = vld [vmem:[#allocation25 + $0x284] ss:$24 sps:$4 sm:$0xff]  }
 0xb40   :  { %3111 = vmatpush1.bf16.msra.mxu1 %v4224_v4  ;;  %v4305_v4 = vld [vmem:[#allocation25 + $0x280] ss:$24 sps:$4 sm:$0xff]  }
 0xb41   :  { %3112 = vmatprep.subr.bf16.mxu1 %v4232_v5  ;;  %v4310_v5 = vld [vmem:[#allocation25 + $0x254] ss:$24 sps:$4 sm:$0xff]  }
 0xb44   :  { %3113 = vmatpush2.bf16.msra.mxu1 %v4230_v8  ;;  %v4308_v8 = vld [vmem:[#allocation25 + $0x250] ss:$24 sps:$4 sm:$0xff]  }
 0xb45   :  { %3114 = vmatprep.subr.bf16.mxu1 %v4238_v10  ;;  %v4313_v10 = vld [vmem:[#allocation25 + $0x224] ss:$24 sps:$4 sm:$0xff]  }
 0xb48   :  { %3115 = vmatpush2.bf16.msra.mxu1 %v4236_v11  ;;  %v4311_v11 = vld [vmem:[#allocation25 + $0x220] ss:$24 sps:$4 sm:$0xff]  }
 0xb49   :  { %3116 = vmatprep.subr.bf16.mxu1 %v4244_v12  ;;  %v4316_v12 = vld [vmem:[#allocation25 + $0x1f4] ss:$24 sps:$4 sm:$0xff]  }
 0xb4c   :  { %3117 = vmatpush2.bf16.msra.mxu1 %v4242_v13  ;;  %v4314_v13 = vld [vmem:[#allocation25 + $0x1f0] ss:$24 sps:$4 sm:$0xff]  }
 0xb4d   :  { %3118 = vmatprep.subr.bf16.mxu1 %v4250_v16  ;;  %v4322_v16 = vld [vmem:[#allocation25 + $0x194] ss:$24 sps:$4 sm:$0xff]  }
 0xb50   :  { %3119 = vmatpush2.bf16.msra.mxu1 %v4248_v17  ;;  %v4320_v17 = vld [vmem:[#allocation25 + $0x190] ss:$24 sps:$4 sm:$0xff]  }
 0xb51   :  { %3120 = vmatprep.subr.bf16.mxu1 %v4256_v20 }
 0xb54   :  { %3121 = vmatpush2.bf16.msra.mxu1 %v4254_v21 }
 0xb55   :  { %3122 = vmatprep.subr.bf16.mxu1 %v4262_v24 }
 0xb58   :  { %3123 = vmatpush2.bf16.msra.mxu1 %v4260_v25 }
 0xb59   :  { %3124 = vmatprep.subr.bf16.mxu1 %v4268_v28 }
 0xb5c   :  { %3125 = vmatpush2.bf16.msra.mxu1 %v4266_v29 }
 0xb5d   :  { %3126 = vmatprep.subr.bf16.mxu1 %v4274_v32 }
 0xb60   :  { %3127 = vmatpush2.bf16.msra.mxu1 %v4272_v33 }
 0xbe3   :  { %v2436_v38 = vpop.f32.mrf.mxu1 }
 0xbe4   :  { %v2437_v39 = vadd.f32 %v2436_v38, %v2315_v36 }
 0xbe5   :  { %v2438_v40 = vpop.f32.mrf.mxu1 }
 0xbe6   :  { %v2439_v41 = vadd.f32 %v2438_v40, %v2319_v37  ;;  %4349 = vtanh.f32 %v2437_v39 }
 0xbe7   :  { %v2440_v42 = vpop.f32.mrf.mxu1 }
 0xbe8   :  { %4351 = vtanh.f32 %v2439_v41 }
 0xbe9   :  { %v2441_v43 = vpop.f32.mrf.mxu1 }
 0xbf3   :  { %v4350_v44 = vpop.eup %4349 }
 0xbf4   :  { %v5088_v48 = vpack.c.bf16 %v4350_v44, %v4350_v44 }
 0xbf5   :  { %v4352_v45 = vpop.eup %4351 }
 0xbf6   :  { %v2446_v46 = vpack.c.bf16 %v4352_v45, %v4352_v45 }
 0xbf8   :  { %3087 = vmatprep.mubr.bf16.mxu0 %v2446_v46  ;;  %3128 = vmatprep.mubr.bf16.mxu1 %v2446_v46 }
 0xbf9   :  { %3088 = vmatmul.mubr.bf16.vlgmr.msra.gmra.mxu0 %v5088_v48  ;;  %3129 = vmatmul.mubr.bf16.vlgmr.msra.gmra.mxu1 %v5088_v48 }
 0xbfa   :  { %3138 = vmatpush1.bf16.msra.mxu0 %v4275_v47  ;;  %3169 = vmatprep.mubr.bf16.mxu0 %v2446_v46 }
 0xbfb   :  { %3139 = vmatprep.subr.bf16.mxu0 %v4280_v49 }
 0xbfe   :  { %3140 = vmatpush1.bf16.msra.mxu0 %v4278_v50 }
 0xbff   :  { %3141 = vmatprep.subr.bf16.mxu0 %v4283_v51 }
 0xc02   :  { %3142 = vmatpush1.bf16.msra.mxu0 %v4281_v52 }
 0xc03   :  { %3143 = vmatprep.subr.bf16.mxu0 %v4286_v53 }
 0xc06   :  { %3144 = vmatpush1.bf16.msra.mxu0 %v4284_v54 }
 0xc07   :  { %3145 = vmatprep.subr.bf16.mxu0 %v4289_v55 }
 0xc0a   :  { %3146 = vmatpush1.bf16.msra.mxu0 %v4287_v56 }
 0xc0b   :  { %3147 = vmatprep.subr.bf16.mxu0 %v4292_v57 }
 0xc0e   :  { %3148 = vmatpush1.bf16.msra.mxu0 %v4290_v58 }
 0xc0f   :  { %3149 = vmatprep.subr.bf16.mxu0 %v4295_v59 }
 0xc12   :  { %3150 = vmatpush1.bf16.msra.mxu0 %v4293_v61 }
 0xc13   :  { %3151 = vmatprep.subr.bf16.mxu0 %v4298_v62 }
 0xc16   :  { %3152 = vmatpush1.bf16.msra.mxu0 %v4296_v63 }
 0xc17   :  { %3153 = vmatprep.subr.bf16.mxu0 %v4301_v0 }
 0xc1a   :  { %3154 = vmatpush2.bf16.msra.mxu0 %v4299_v1 }
 0xc1b   :  { %3155 = vmatprep.subr.bf16.mxu0 %v4304_v2 }
 0xc1e   :  { %3156 = vmatpush2.bf16.msra.mxu0 %v4302_v3 }
 0xc1f   :  { %3157 = vmatprep.subr.bf16.mxu0 %v4307_v60 }
 0xc22   :  { %3158 = vmatpush2.bf16.msra.mxu0 %v4305_v4 }
 0xc23   :  { %3159 = vmatprep.subr.bf16.mxu0 %v4310_v5 }
 0xc26   :  { %3160 = vmatpush2.bf16.msra.mxu0 %v4308_v8 }
 0xc27   :  { %3161 = vmatprep.subr.bf16.mxu0 %v4313_v10 }
 0xc2a   :  { %3162 = vmatpush2.bf16.msra.mxu0 %v4311_v11 }
 0xc2b   :  { %3163 = vmatprep.subr.bf16.mxu0 %v4316_v12 }
 0xc2e   :  { %3164 = vmatpush2.bf16.msra.mxu0 %v4314_v13 }
 0xc2f   :  { %3165 = vmatprep.subr.bf16.mxu0 %v4319_v14 }
 0xc32   :  { %3166 = vmatpush2.bf16.msra.mxu0 %v4317_v15 }
 0xc33   :  { %3167 = vmatprep.subr.bf16.mxu0 %v4322_v16 }
 0xc36   :  { %3168 = vmatpush2.bf16.msra.mxu0 %v4320_v17 }
 0xc39   :  { %3170 = vmatmul.mubr.bf16.vlgmr.msra.gmra.mxu0 %v5088_v48 }
 0xc3a   :  { %4688 = shalt.err (!%p4685_p9)
}
 0xc3b   :  { %3229 = dma.vmem_to_hbm [thread:$0]  %s3227_s2, 128, %s5124_s16, [#allocation4]   ;;  %v2555_v18 = vsub.s32 2, %v4939_v6  ;;  %v2543_v19 = vld [vmem:[%s5123_s15 + $0xf] sm:$0x3f]  ;;  %v2559_v20 = vsub.s32 3, %v4939_v6 }
 0xc3c   :  { %v2548_v21 = vrot.slane %v2543_v19, %v4942_v7  ;;  %v2552_v23 = vrot.slane %v2543_v19, %v4948_v9  ;;  %v2563_v51 = vsub.s32 4, %v4939_v6  ;;  %v2567_v52 = vsub.s32 5, %v4939_v6  ;;  %s4762_s15 = smov [#allocation27]  }
 0xc3d   :  { %v2556_v22 = vrot.slane %v2543_v19, %v2555_v18  ;;  %v2560_v24 = vrot.slane %v2543_v19, %v2559_v20  ;;  %s3236_s16 = sshll.u32 %s4762_s15, 4  ;;  %s3237_s16 = int_to_ptr.vmem [resolvable:$true] %s3236_s16 }
 0xc3e   :  { %v2564_v53 = vrot.slane %v2543_v19, %v2563_v51  ;;  %v2568_v54 = vrot.slane %v2543_v19, %v2567_v52  ;;  %s4697_s21 = scalar_lea.vmem %s3237_s16, 768  ;;  %p4702_p11 = scmp.lt.s32.totalorder %s3237_s16, %s3237_s16 }
 0xc3f   :  { %p4698_p10 = scmp.ne.s32.totalorder %s3237_s16, %s4697_s21  ;;  %p4703_p12 = scmp.lt.s32.totalorder %s4697_s21, %s4697_s21 }
 0xc41   :  { %p4704_p13 = por %p4703_p12, %p4702_p11 }
 0xc43   :  { %p4705_p0 = pnand %p4704_p13, %p4698_p10 }
 0xcb9   :  { %v3089_v25 = vpop.f32.mrf.mxu0  ;;  %v3130_v26 = vpop.f32.mrf.mxu1 }
 0xcba   :  { %v3090_v27 = vadd.f32 %v3089_v25, %v2548_v21  ;;  %v3131_v28 = vadd.f32 %v3130_v26, %v2556_v22 }
 0xcbb   :  { %v3091_v29 = vpop.f32.mrf.mxu0  ;;  %v3132_v30 = vpop.f32.mrf.mxu1 }
 0xcbc   :  { %v3571_v31 = vmul.f32 -1.442695, %v3090_v27  ;;  %v3573_v32 = vmul.f32 -1.442695, %v3131_v28  ;;  %v3092_v33 = vadd.f32 %v3091_v29, %v2552_v23  ;;  %v3133_v34 = vadd.f32 %v3132_v30, %v2560_v24 }
 0xcbd   :  { %v3093_v35 = vpop.f32.mrf.mxu0  ;;  %v3134_v36 = vpop.f32.mrf.mxu1 }
 0xcbe   :  { %4353 = vpow2.f32 %v3571_v31  ;;  %v3572_v37 = vmul.f32 -1.442695, %v3092_v33  ;;  %v3574_v38 = vmul.f32 -1.442695, %v3133_v34 }
 0xcbf   :  { %4355 = vpow2.f32 %v3573_v32  ;;  %v3094_v7 = vpop.f32.mrf.mxu0  ;;  %v3135_v39 = vpop.f32.mrf.mxu1 }
 0xcc0   :  { %4357 = vpow2.f32 %v3572_v37 }
 0xcc1   :  { %4359 = vpow2.f32 %v3574_v38 }
 0xccb   :  { %v4354_v9 = vpop.eup %4353 }
 0xccc   :  { %v4356_v40 = vpop.eup %4355  ;;  %v3196_v41 = vadd.f32 1.0, %v4354_v9 }
 0xccd   :  { %v4358_v42 = vpop.eup %4357  ;;  %v3198_v43 = vadd.f32 1.0, %v4356_v40 }
 0xcce   :  { %v4360_v44 = vpop.eup %4359  ;;  %4361 = vrcp.f32 %v3196_v41  ;;  %v3197_v45 = vadd.f32 1.0, %v4358_v42 }
 0xccf   :  { %4363 = vrcp.f32 %v3198_v43  ;;  %v3199_v46 = vadd.f32 1.0, %v4360_v44 }
 0xcd0   :  { %4365 = vrcp.f32 %v3197_v45 }
 0xcd1   :  { %4367 = vrcp.f32 %v3199_v46 }
 0xcdb   :  { %v4362_v47 = vpop.eup %4361 }
 0xcdc   :  { %v4364_v48 = vpop.eup %4363  ;;  %3214 = vst [vmem:[#allocation27] sm:$0xff] %v4362_v47 }
 0xcdd   :  { %v4366_v49 = vpop.eup %4365  ;;  %3216 = vst [vmem:[#allocation27 + $0x10] sm:$0xff] %v4364_v48 }
 0xcde   :  { %v4368_v50 = vpop.eup %4367  ;;  %3215 = vst [vmem:[#allocation27 + $0x8] sm:$0xff] %v4366_v49 }
 0xcdf   :  { %3217 = vst [vmem:[#allocation27 + $0x18] sm:$0xff] %v4368_v50 }
 0xcf9   :  { %v3171_v55 = vpop.f32.mrf.mxu0 }
 0xcfa   :  { %v3172_v56 = vadd.f32 %v3171_v55, %v2564_v53 }
 0xcfb   :  { %v3173_v57 = vpop.f32.mrf.mxu0 }
 0xcfc   :  { %v3575_v58 = vmul.f32 -1.442695, %v3172_v56  ;;  %v3174_v59 = vadd.f32 %v3173_v57, %v2568_v54 }
 0xcfd   :  { %v3175_v61 = vpop.f32.mrf.mxu0 }
 0xcfe   :  { %4369 = vpow2.f32 %v3575_v58  ;;  %v3576_v62 = vmul.f32 -1.442695, %v3174_v59 }
 0xcff   :  { %v3176_v63 = vpop.f32.mrf.mxu0 }
 0xd00   :  { %4371 = vpow2.f32 %v3576_v62 }
 0xd0b   :  { %v4370_v0 = vpop.eup %4369 }
 0xd0c   :  { %v3200_v1 = vadd.f32 1.0, %v4370_v0 }
 0xd0d   :  { %v4372_v2 = vpop.eup %4371 }
 0xd0e   :  { %4373 = vrcp.f32 %v3200_v1  ;;  %v3201_v3 = vadd.f32 1.0, %v4372_v2 }
 0xd10   :  { %4375 = vrcp.f32 %v3201_v3 }
 0xd1b   :  { %v4374_v6 = vpop.eup %4373 }
 0xd1c   :  { %3218 = vst [vmem:[#allocation27 + $0x20] sm:$0xff] %v4374_v6 }
 0xd1d   :  { %v4376_v60 = vpop.eup %4375 }
 0xd1e   :  { %3219 = vst [vmem:[#allocation27 + $0x28] sm:$0xff] %v4376_v60 }
 0xd1f   :  { %4708 = shalt.err (!%p4705_p0)
}
 0xd20   :  { %3239 = dma.vmem_to_hbm [thread:$0]  %s3237_s16, 768, %s5125_s17, [#allocation28]  }
 0xd21   :  { %4733 = dma.done.wait [#allocation4], 128  }
 0xd22   :  { %4734 = vsyncadd [#allocation4], 4294967168 }
 0xd23   :  { %4735 = dma.done.wait [#allocation28], 768  }
 0xd24   :  { %4736 = vsyncadd [#allocation28], 4294966528 }
 0xd25   :  { %3246 = vsyncpa [#allocation3], 1 }
 0xd26   :  { %3247 = vsyncpa [#allocation6], 1 }
 0xd27   :  { %3248 = vsyncpa [#allocation9], 1 }
 0xd28   :  { %3249 = vsyncpa [#allocation12], 1 }
 0xd29   :  { %3250 = vsyncpa [#allocation15], 1 }
 0xd2a   :  { %3251 = vsyncpa [#allocation18], 1 }
 0xd2b   :  { %3252 = vsyncpa [#allocation21], 1 }
 0xd2c   :  { %3253 = vsyncpa [#allocation24], 1 }
 0xd2d   :  { %3254 = vsyncpa [#allocation4], 1 }
 0xd2e   :  { %3255 = vsyncpa [#allocation28], 1 }

</bundles_post_ra>
